<compile_context>
chip_gen: v6e
topology: v6e:2x2x1
jax: 0.10.0
libtpu: 0.0.40
codegen_flags: <defaults>
</compile_context>

<pallas_src>
import math
import functools

import jax
import jax.numpy as jnp
from jax.experimental import pallas as pl
from jax.experimental.pallas import tpu as pltpu


# ---------------------------------------------------------------------------
# Helpers
# ---------------------------------------------------------------------------

def _row_tile(M, cap=512):
    """Largest row-tile <= cap that divides M and keeps (8,128) tiling happy."""
    if M <= cap:
        return M
    for t in range(cap - (cap % 8), 7, -8):
        if M % t == 0:
            return t
    return M  # fallback: single block


# ---------------------------------------------------------------------------
# Kernel 1: fused QKV projection  (one launch, x loaded once)
# ---------------------------------------------------------------------------

def _qkv_kernel(x_ref, wq_ref, wk_ref, wv_ref, q_ref, k_ref, v_ref):
    x = x_ref[...]                                            # (TM, D)
    q_ref[...] = jnp.dot(x, wq_ref[...], preferred_element_type=jnp.float32)
    k_ref[...] = jnp.dot(x, wk_ref[...], preferred_element_type=jnp.float32)
    v_ref[...] = jnp.dot(x, wv_ref[...], preferred_element_type=jnp.float32)


def qkv_proj(x2d, wq, wk, wv):
    M, D = x2d.shape
    tm = _row_tile(M)
    row = pl.BlockSpec((tm, D), lambda i: (i, 0))
    wspec = pl.BlockSpec((D, D), lambda i: (0, 0))            # weights resident
    return pl.pallas_call(
        _qkv_kernel,
        grid=(M // tm,),
        in_specs=[row, wspec, wspec, wspec],
        out_specs=[row, row, row],
        out_shape=[jax.ShapeDtypeStruct((M, D), jnp.float32)] * 3,
        compiler_params=pltpu.CompilerParams(
            dimension_semantics=("parallel",)),
    )(x2d, wq, wk, wv)


# ---------------------------------------------------------------------------
# Kernel 2: attention, grid over batch only (all heads handled in-kernel)
# ---------------------------------------------------------------------------

def _attn_kernel(q_ref, k_ref, v_ref, bias_ref, o_ref, *, scale):
    q = q_ref[...] * scale                                    # (H, S, Dh)
    k = k_ref[...]                                            # (H, S, Dh)
    v = v_ref[...]                                            # (H, S, Dh)
    bias = bias_ref[...]                                      # (1, S) additive
    # Batched QK^T without materializing a transpose of K.
    s = jnp.einsum("hqd,hkd->hqk", q, k,
                   preferred_element_type=jnp.float32)        # (H, S, S)
    s = s + bias[None, :, :]                                  # mask key positions
    s_max = jnp.max(s, axis=-1, keepdims=True)
    p = jnp.exp(s - s_max)
    inv = pl.reciprocal(jnp.sum(p, axis=-1, keepdims=True), approx=True)
    attn = p * inv
    o_ref[...] = jnp.einsum("hqk,hkd->hqd", attn, v,
                            preferred_element_type=jnp.float32)


def attention(qh, kh, vh, bias, scale):
    B, H, S, Dh = qh.shape
    spec_qkv = pl.BlockSpec((None, H, S, Dh), lambda b: (b, 0, 0, 0))
    spec_b = pl.BlockSpec((None, 1, S), lambda b: (b, 0, 0))
    return pl.pallas_call(
        functools.partial(_attn_kernel, scale=scale),
        grid=(B,),
        in_specs=[spec_qkv, spec_qkv, spec_qkv, spec_b],
        out_specs=spec_qkv,
        out_shape=jax.ShapeDtypeStruct((B, H, S, Dh), jnp.float32),
        compiler_params=pltpu.CompilerParams(
            dimension_semantics=("parallel",)),
    )(qh, kh, vh, bias)


# ---------------------------------------------------------------------------
# Kernel 3: fused  a@wo + residual + LN1 + FFN(ReLU) + residual + LN2
# ---------------------------------------------------------------------------

def _post_attn_ffn_kernel(x_ref, a_ref, wo_ref, g1_ref, be1_ref,
                          w1_ref, b1_ref, w2_ref, b2_ref,
                          g2_ref, be2_ref, o_ref):
    def ln(z, g, b):
        mu = jnp.mean(z, axis=-1, keepdims=True)
        var = jnp.mean(jnp.square(z - mu), axis=-1, keepdims=True)
        return (z - mu) * jax.lax.rsqrt(var + 1e-5) * g + b

    attn_out = jnp.dot(a_ref[...], wo_ref[...],
                       preferred_element_type=jnp.float32)
    y1 = ln(x_ref[...] + attn_out, g1_ref[...], be1_ref[...])
    h = jnp.maximum(
        jnp.dot(y1, w1_ref[...], preferred_element_type=jnp.float32)
        + b1_ref[...], 0.0)
    ff = jnp.dot(h, w2_ref[...], preferred_element_type=jnp.float32) + b2_ref[...]
    o_ref[...] = ln(y1 + ff, g2_ref[...], be2_ref[...])


def post_attn_ffn(x2d, a2d, wo, g1, be1, w1, b1, w2, b2, g2, be2):
    M, D = x2d.shape
    F = w1.shape[1]
    tm = _row_tile(M)
    row = pl.BlockSpec((tm, D), lambda i: (i, 0))

    def resident(shape):
        return pl.BlockSpec(shape, lambda i: tuple(0 for _ in shape))

    return pl.pallas_call(
        _post_attn_ffn_kernel,
        grid=(M // tm,),
        in_specs=[row, row,
                  resident((D, D)),                       # wo
                  resident((1, D)), resident((1, D)),     # g1, be1
                  resident((D, F)), resident((1, F)),     # w1, b1
                  resident((F, D)), resident((1, D)),     # w2, b2
                  resident((1, D)), resident((1, D))],    # g2, be2
        out_specs=row,
        out_shape=jax.ShapeDtypeStruct((M, D), jnp.float32),
        compiler_params=pltpu.CompilerParams(
            dimension_semantics=("parallel",),
            vmem_limit_bytes=48 * 1024 * 1024),
    )(x2d, a2d, wo, g1.reshape(1, D), be1.reshape(1, D),
      w1, b1.reshape(1, F), w2, b2.reshape(1, D),
      g2.reshape(1, D), be2.reshape(1, D))


# ---------------------------------------------------------------------------
# Parameter init (deterministic, synthetic — mirrors nn.Linear/LayerNorm shapes)
# ---------------------------------------------------------------------------

def init_params(key, d_model, nhead, dim_ff, num_layers):
    def w(k, fan_in, fan_out):
        bound = 1.0 / math.sqrt(fan_in)
        return jax.random.uniform(k, (fan_in, fan_out), jnp.float32,
                                  -bound, bound)

    params = []
    for _ in range(num_layers):
        key, *ks = jax.random.split(key, 9)
        params.append(dict(
            wq=w(ks[0], d_model, d_model),
            wk=w(ks[1], d_model, d_model),
            wv=w(ks[2], d_model, d_model),
            wo=w(ks[3], d_model, d_model),
            w1=w(ks[4], d_model, dim_ff),
            b1=jax.random.uniform(ks[5], (dim_ff,), jnp.float32,
                                  -1.0 / math.sqrt(d_model),
                                  1.0 / math.sqrt(d_model)),
            w2=w(ks[6], dim_ff, d_model),
            b2=jax.random.uniform(ks[7], (d_model,), jnp.float32,
                                  -1.0 / math.sqrt(dim_ff),
                                  1.0 / math.sqrt(dim_ff)),
            g1=jnp.ones((d_model,), jnp.float32),
            be1=jnp.zeros((d_model,), jnp.float32),
            g2=jnp.ones((d_model,), jnp.float32),
            be2=jnp.zeros((d_model,), jnp.float32),
        ))
    return params


# ---------------------------------------------------------------------------
# Encoder forward (JAX glue is only free row-major reshapes / bitcasts)
# ---------------------------------------------------------------------------

def encoder_forward(params, x, nhead, mask=None):
    B, S, D = x.shape
    Dh = D // nhead
    scale = 1.0 / math.sqrt(Dh)

    # Additive mask bias, computed once for the whole stack.
    if mask is None:
        bias = jnp.zeros((B, 1, S), jnp.float32)
    else:
        # TODO(synk): the masked path mirrors torch's masked_fill over the key
        # axis of the row-major head split; it is not validated against the
        # PyTorch module with a non-trivial mask.
        bias = jnp.where(mask.reshape(B, 1, S), -1e30, 0.0).astype(jnp.float32)

    x2d = x.reshape(B * S, D)
    for p in params:
        q2d, k2d, v2d = qkv_proj(x2d, p["wq"], p["wk"], p["wv"])
        # The module's row-major head split (matches torch .view, free bitcast).
        qh = q2d.reshape(B, nhead, S, Dh)
        kh = k2d.reshape(B, nhead, S, Dh)
        vh = v2d.reshape(B, nhead, S, Dh)
        a = attention(qh, kh, vh, bias, scale)            # (B, H, S, Dh)
        a2d = a.reshape(B * S, D)                         # matches .view(B,-1,D)
        x2d = post_attn_ffn(x2d, a2d, p["wo"], p["g1"], p["be1"],
                            p["w1"], p["b1"], p["w2"], p["b2"],
                            p["g2"], p["be2"])
    return x2d.reshape(B, S, D)
    # TODO(synk): MultiHeadAttention's `output_attention=True` branch is never
    # reached by Encoder.forward, so it is not implemented here.


# ---------------------------------------------------------------------------
# Pure-JAX reference (for correctness check)
# ---------------------------------------------------------------------------

def _layer_norm_ref(z, g, b):
    mu = jnp.mean(z, axis=-1, keepdims=True)
    var = jnp.mean(jnp.square(z - mu), axis=-1, keepdims=True)
    return (z - mu) * jax.lax.rsqrt(var + 1e-5) * g + b


def encoder_reference(params, x, nhead):
    B, S, D = x.shape
    Dh = D // nhead
    for p in params:
        q = (x @ p["wq"]).reshape(B, nhead, S, Dh)
        k = (x @ p["wk"]).reshape(B, nhead, S, Dh)
        v = (x @ p["wv"]).reshape(B, nhead, S, Dh)
        u = jnp.einsum("bhqd,bhkd->bhqk", q, k) / math.sqrt(Dh)
        attn = jax.nn.softmax(u, axis=-1)
        a = jnp.einsum("bhqk,bhkd->bhqd", attn, v).reshape(B, S, D)
        a = a @ p["wo"]
        x = _layer_norm_ref(x + a, p["g1"], p["be1"])
        f = jnp.maximum(x @ p["w1"] + p["b1"], 0.0) @ p["w2"] + p["b2"]
        x = _layer_norm_ref(x + f, p["g2"], p["be2"])
    return x


if __name__ == "__main__":
    d_model, nhead, dim_feedforward, num_layers = 32, 4, 64, 2
    B, S = 2, 8

    key = jax.random.PRNGKey(0)
    kp, kx = jax.random.split(key)
    params = init_params(kp, d_model, nhead, dim_feedforward, num_layers)
    x = jax.random.normal(kx, (B, S, d_model), jnp.float32)

    fwd = jax.jit(lambda p, xx: encoder_forward(p, xx, nhead))
    out = fwd(params, x)
    out = jax.block_until_ready(out)

    ref = encoder_reference(params, x, nhead)
    assert out.shape == (B, S, d_model)
    err = float(jnp.max(jnp.abs(out - ref)))
    assert err < 2e-3, f"mismatch vs reference: {err}"

    print("KERNEL_OK")
</pallas_src>

<mosaic_0001>
module attributes {stable_mosaic.version = 11 : i64} {
  func.func @_qkv_kernel(%arg0: i32, %arg1: memref<16x32xf32, #tpu.memory_space<vmem>>, %arg2: memref<32x32xf32, #tpu.memory_space<vmem>>, %arg3: memref<32x32xf32, #tpu.memory_space<vmem>>, %arg4: memref<32x32xf32, #tpu.memory_space<vmem>>, %arg5: memref<16x32xf32, #tpu.memory_space<vmem>>, %arg6: memref<16x32xf32, #tpu.memory_space<vmem>>, %arg7: memref<16x32xf32, #tpu.memory_space<vmem>>) attributes {dimension_semantics = [#tpu.dimension_semantics<parallel>], iteration_bounds = array<i64: 1>, scalar_prefetch = 0 : i64, scratch_operands = 0 : i64, tpu.core_type = #tpu.core_type<tc>, window_params = [{transform_indices = @transform_0, window_bounds = array<i64: 16, 32>}, {pipeline_mode = #tpu.pipeline_mode<synchronous>, transform_indices = @transform_1, window_bounds = array<i64: 32, 32>}, {pipeline_mode = #tpu.pipeline_mode<synchronous>, transform_indices = @transform_2, window_bounds = array<i64: 32, 32>}, {pipeline_mode = #tpu.pipeline_mode<synchronous>, transform_indices = @transform_3, window_bounds = array<i64: 32, 32>}, {transform_indices = @transform_4, window_bounds = array<i64: 16, 32>}, {transform_indices = @transform_5, window_bounds = array<i64: 16, 32>}, {transform_indices = @transform_6, window_bounds = array<i64: 16, 32>}]} {
    %c0 = arith.constant 0 : index
    %c0_0 = arith.constant 0 : index
    %0 = vector.load %arg1[%c0, %c0_0] : memref<16x32xf32, #tpu.memory_space<vmem>>, vector<16x32xf32>
    %c0_1 = arith.constant 0 : index
    %c0_2 = arith.constant 0 : index
    %1 = vector.load %arg2[%c0_1, %c0_2] : memref<32x32xf32, #tpu.memory_space<vmem>>, vector<32x32xf32>
    %cst = arith.constant dense<0.000000e+00> : vector<16x32xf32>
    %2 = tpu.matmul %0, %1, %cst {dimension_numbers = #tpu.dot_dimension_numbers<[1], [0], [0], [1], [0, 0, 1, 1], [], []>} : vector<16x32xf32>, vector<32x32xf32>, vector<16x32xf32> -> vector<16x32xf32>
    %c0_3 = arith.constant 0 : index
    %c0_4 = arith.constant 0 : index
    %3 = vector.load %arg5[%c0_3, %c0_4] : memref<16x32xf32, #tpu.memory_space<vmem>>, vector<16x32xf32>
    tpu.vector_store %arg5[%c0_3, %c0_4], %2 {strides = array<i32>} : memref<16x32xf32, #tpu.memory_space<vmem>>, vector<16x32xf32>,
    %c0_5 = arith.constant 0 : index
    %c0_6 = arith.constant 0 : index
    %4 = vector.load %arg3[%c0_5, %c0_6] : memref<32x32xf32, #tpu.memory_space<vmem>>, vector<32x32xf32>
    %cst_7 = arith.constant dense<0.000000e+00> : vector<16x32xf32>
    %5 = tpu.matmul %0, %4, %cst_7 {dimension_numbers = #tpu.dot_dimension_numbers<[1], [0], [0], [1], [0, 0, 1, 1], [], []>} : vector<16x32xf32>, vector<32x32xf32>, vector<16x32xf32> -> vector<16x32xf32>
    %c0_8 = arith.constant 0 : index
    %c0_9 = arith.constant 0 : index
    %6 = vector.load %arg6[%c0_8, %c0_9] : memref<16x32xf32, #tpu.memory_space<vmem>>, vector<16x32xf32>
    tpu.vector_store %arg6[%c0_8, %c0_9], %5 {strides = array<i32>} : memref<16x32xf32, #tpu.memory_space<vmem>>, vector<16x32xf32>,
    %c0_10 = arith.constant 0 : index
    %c0_11 = arith.constant 0 : index
    %7 = vector.load %arg4[%c0_10, %c0_11] : memref<32x32xf32, #tpu.memory_space<vmem>>, vector<32x32xf32>
    %cst_12 = arith.constant dense<0.000000e+00> : vector<16x32xf32>
    %8 = tpu.matmul %0, %7, %cst_12 {dimension_numbers = #tpu.dot_dimension_numbers<[1], [0], [0], [1], [0, 0, 1, 1], [], []>} : vector<16x32xf32>, vector<32x32xf32>, vector<16x32xf32> -> vector<16x32xf32>
    %c0_13 = arith.constant 0 : index
    %c0_14 = arith.constant 0 : index
    %9 = vector.load %arg7[%c0_13, %c0_14] : memref<16x32xf32, #tpu.memory_space<vmem>>, vector<16x32xf32>
    tpu.vector_store %arg7[%c0_13, %c0_14], %8 {strides = array<i32>} : memref<16x32xf32, #tpu.memory_space<vmem>>, vector<16x32xf32>,
    return
  }
  func.func @transform_0(%arg0: i32) -> (i32, i32) {
    %c0_i32 = arith.constant 0 : i32
    %c0_i32_0 = arith.constant 0 : i32
    return %arg0, %c0_i32 : i32, i32
  }
  func.func @transform_1(%arg0: i32) -> (i32, i32) {
    %c0_i32 = arith.constant 0 : i32
    %c0_i32_0 = arith.constant 0 : i32
    %c0_i32_1 = arith.constant 0 : i32
    return %c0_i32, %c0_i32_0 : i32, i32
  }
  func.func @transform_2(%arg0: i32) -> (i32, i32) {
    %c0_i32 = arith.constant 0 : i32
    %c0_i32_0 = arith.constant 0 : i32
    %c0_i32_1 = arith.constant 0 : i32
    return %c0_i32, %c0_i32_0 : i32, i32
  }
  func.func @transform_3(%arg0: i32) -> (i32, i32) {
    %c0_i32 = arith.constant 0 : i32
    %c0_i32_0 = arith.constant 0 : i32
    %c0_i32_1 = arith.constant 0 : i32
    return %c0_i32, %c0_i32_0 : i32, i32
  }
  func.func @transform_4(%arg0: i32) -> (i32, i32) {
    %c0_i32 = arith.constant 0 : i32
    %c0_i32_0 = arith.constant 0 : i32
    return %arg0, %c0_i32 : i32, i32
  }
  func.func @transform_5(%arg0: i32) -> (i32, i32) {
    %c0_i32 = arith.constant 0 : i32
    %c0_i32_0 = arith.constant 0 : i32
    return %arg0, %c0_i32 : i32, i32
  }
  func.func @transform_6(%arg0: i32) -> (i32, i32) {
    %c0_i32 = arith.constant 0 : i32
    %c0_i32_0 = arith.constant 0 : i32
    return %arg0, %c0_i32 : i32, i32
  }
}

module attributes {stable_mosaic.version = 11 : i64} {
  func.func @_attn_kernel(%arg0: i32, %arg1: memref<1x4x8x8xf32, #tpu.memory_space<vmem>>, %arg2: memref<1x4x8x8xf32, #tpu.memory_space<vmem>>, %arg3: memref<1x4x8x8xf32, #tpu.memory_space<vmem>>, %arg4: memref<1x1x8xf32, #tpu.memory_space<vmem>>, %arg5: memref<1x4x8x8xf32, #tpu.memory_space<vmem>>) attributes {dimension_semantics = [#tpu.dimension_semantics<parallel>], iteration_bounds = array<i64: 2>, scalar_prefetch = 0 : i64, scratch_operands = 0 : i64, tpu.core_type = #tpu.core_type<tc>, window_params = [{transform_indices = @transform_0, window_bounds = array<i64: 1, 4, 8, 8>}, {transform_indices = @transform_1, window_bounds = array<i64: 1, 4, 8, 8>}, {transform_indices = @transform_2, window_bounds = array<i64: 1, 4, 8, 8>}, {transform_indices = @transform_3, window_bounds = array<i64: 1, 1, 8>}, {transform_indices = @transform_4, window_bounds = array<i64: 1, 4, 8, 8>}]} {
    %c0 = arith.constant 0 : index
    %c0_0 = arith.constant 0 : index
    %c0_1 = arith.constant 0 : index
    %c0_2 = arith.constant 0 : index
    %0 = vector.load %arg1[%c0, %c0_0, %c0_1, %c0_2] : memref<1x4x8x8xf32, #tpu.memory_space<vmem>>, vector<1x4x8x8xf32>
    %1 = vector.shape_cast %0 : vector<1x4x8x8xf32> to vector<4x8x8xf32>
    %cst = arith.constant 0.353553385 : f32
    %2 = vector.broadcast %cst : f32 to vector<4x8x8xf32>
    %3 = arith.mulf %1, %2 : vector<4x8x8xf32>
    %c0_3 = arith.constant 0 : index
    %c0_4 = arith.constant 0 : index
    %c0_5 = arith.constant 0 : index
    %c0_6 = arith.constant 0 : index
    %4 = vector.load %arg2[%c0_3, %c0_4, %c0_5, %c0_6] : memref<1x4x8x8xf32, #tpu.memory_space<vmem>>, vector<1x4x8x8xf32>
    %5 = vector.shape_cast %4 : vector<1x4x8x8xf32> to vector<4x8x8xf32>
    %c0_7 = arith.constant 0 : index
    %c0_8 = arith.constant 0 : index
    %c0_9 = arith.constant 0 : index
    %c0_10 = arith.constant 0 : index
    %6 = vector.load %arg3[%c0_7, %c0_8, %c0_9, %c0_10] : memref<1x4x8x8xf32, #tpu.memory_space<vmem>>, vector<1x4x8x8xf32>
    %7 = vector.shape_cast %6 : vector<1x4x8x8xf32> to vector<4x8x8xf32>
    %c0_11 = arith.constant 0 : index
    %c0_12 = arith.constant 0 : index
    %c0_13 = arith.constant 0 : index
    %8 = vector.load %arg4[%c0_11, %c0_12, %c0_13] : memref<1x1x8xf32, #tpu.memory_space<vmem>>, vector<1x1x8xf32>
    %9 = vector.shape_cast %8 : vector<1x1x8xf32> to vector<1x8xf32>
    "tpu.trace_start"() <{level = 10 : i32, message = "hqd,hkd->hqk"}> : () -> ()
    %cst_14 = arith.constant dense<0.000000e+00> : vector<4x8x8xf32>
    %10 = tpu.matmul %3, %5, %cst_14 {dimension_numbers = #tpu.dot_dimension_numbers<[2], [2], [1], [1], [0, 0, 0, 1, 1, 1], [0], [0]>} : vector<4x8x8xf32>, vector<4x8x8xf32>, vector<4x8x8xf32> -> vector<4x8x8xf32>
    "tpu.trace_stop"() : () -> ()
    %11 = vector.shape_cast %9 : vector<1x8xf32> to vector<1x1x8xf32>
    %12 = vector.broadcast %11 : vector<1x1x8xf32> to vector<4x8x8xf32>
    %13 = arith.addf %10, %12 : vector<4x8x8xf32>
    %cst_15 = arith.constant dense<0xFF800000> : vector<4x8xf32>
    %14 = vector.multi_reduction <maximumf>, %13, %cst_15 [2] : vector<4x8x8xf32> to vector<4x8xf32>
    %15 = vector.shape_cast %14 : vector<4x8xf32> to vector<4x8x1xf32>
    %16 = vector.broadcast %15 : vector<4x8x1xf32> to vector<4x8x8xf32>
    %17 = arith.subf %13, %16 : vector<4x8x8xf32>
    %18 = math.exp %17 : vector<4x8x8xf32>
    %cst_16 = arith.constant dense<0.000000e+00> : vector<4x8xf32>
    %19 = vector.multi_reduction <add>, %18, %cst_16 [2] : vector<4x8x8xf32> to vector<4x8xf32>
    %20 = vector.shape_cast %19 : vector<4x8xf32> to vector<4x8x1xf32>
    %21 = tpu.reciprocal %20 {approx = true} : vector<4x8x1xf32> -> vector<4x8x1xf32>
    %22 = vector.broadcast %21 : vector<4x8x1xf32> to vector<4x8x8xf32>
    %23 = arith.mulf %18, %22 : vector<4x8x8xf32>
    "tpu.trace_start"() <{level = 10 : i32, message = "hqk,hkd->hqd"}> : () -> ()
    %cst_17 = arith.constant dense<0.000000e+00> : vector<4x8x8xf32>
    %24 = tpu.matmul %23, %7, %cst_17 {dimension_numbers = #tpu.dot_dimension_numbers<[2], [1], [1], [2], [0, 0, 0, 1, 1, 2], [0], [0]>} : vector<4x8x8xf32>, vector<4x8x8xf32>, vector<4x8x8xf32> -> vector<4x8x8xf32>
    "tpu.trace_stop"() : () -> ()
    %c0_18 = arith.constant 0 : index
    %c0_19 = arith.constant 0 : index
    %c0_20 = arith.constant 0 : index
    %c0_21 = arith.constant 0 : index
    %25 = vector.load %arg5[%c0_18, %c0_19, %c0_20, %c0_21] : memref<1x4x8x8xf32, #tpu.memory_space<vmem>>, vector<1x4x8x8xf32>
    %26 = vector.shape_cast %25 : vector<1x4x8x8xf32> to vector<4x8x8xf32>
    %27 = vector.shape_cast %24 : vector<4x8x8xf32> to vector<1x4x8x8xf32>
    tpu.vector_store %arg5[%c0_18, %c0_19, %c0_20, %c0_21], %27 {strides = array<i32>} : memref<1x4x8x8xf32, #tpu.memory_space<vmem>>, vector<1x4x8x8xf32>,
    return
  }
  func.func @transform_0(%arg0: i32) -> (i32, i32, i32, i32) {
    %c0_i32 = arith.constant 0 : i32
    %c0_i32_0 = arith.constant 0 : i32
    %c0_i32_1 = arith.constant 0 : i32
    %c0_i32_2 = arith.constant 0 : i32
    return %arg0, %c0_i32, %c0_i32_0, %c0_i32_1 : i32, i32, i32, i32
  }
  func.func @transform_1(%arg0: i32) -> (i32, i32, i32, i32) {
    %c0_i32 = arith.constant 0 : i32
    %c0_i32_0 = arith.constant 0 : i32
    %c0_i32_1 = arith.constant 0 : i32
    %c0_i32_2 = arith.constant 0 : i32
    return %arg0, %c0_i32, %c0_i32_0, %c0_i32_1 : i32, i32, i32, i32
  }
  func.func @transform_2(%arg0: i32) -> (i32, i32, i32, i32) {
    %c0_i32 = arith.constant 0 : i32
    %c0_i32_0 = arith.constant 0 : i32
    %c0_i32_1 = arith.constant 0 : i32
    %c0_i32_2 = arith.constant 0 : i32
    return %arg0, %c0_i32, %c0_i32_0, %c0_i32_1 : i32, i32, i32, i32
  }
  func.func @transform_3(%arg0: i32) -> (i32, i32, i32) {
    %c0_i32 = arith.constant 0 : i32
    %c0_i32_0 = arith.constant 0 : i32
    %c0_i32_1 = arith.constant 0 : i32
    return %arg0, %c0_i32, %c0_i32_0 : i32, i32, i32
  }
  func.func @transform_4(%arg0: i32) -> (i32, i32, i32, i32) {
    %c0_i32 = arith.constant 0 : i32
    %c0_i32_0 = arith.constant 0 : i32
    %c0_i32_1 = arith.constant 0 : i32
    %c0_i32_2 = arith.constant 0 : i32
    return %arg0, %c0_i32, %c0_i32_0, %c0_i32_1 : i32, i32, i32, i32
  }
}

module attributes {stable_mosaic.version = 11 : i64} {
  func.func @_post_attn_ffn_kernel(%arg0: i32, %arg1: memref<16x32xf32, #tpu.memory_space<vmem>>, %arg2: memref<16x32xf32, #tpu.memory_space<vmem>>, %arg3: memref<32x32xf32, #tpu.memory_space<vmem>>, %arg4: memref<1x32xf32, #tpu.memory_space<vmem>>, %arg5: memref<1x32xf32, #tpu.memory_space<vmem>>, %arg6: memref<32x64xf32, #tpu.memory_space<vmem>>, %arg7: memref<1x64xf32, #tpu.memory_space<vmem>>, %arg8: memref<64x32xf32, #tpu.memory_space<vmem>>, %arg9: memref<1x32xf32, #tpu.memory_space<vmem>>, %arg10: memref<1x32xf32, #tpu.memory_space<vmem>>, %arg11: memref<1x32xf32, #tpu.memory_space<vmem>>, %arg12: memref<16x32xf32, #tpu.memory_space<vmem>>) attributes {dimension_semantics = [#tpu.dimension_semantics<parallel>], iteration_bounds = array<i64: 1>, scalar_prefetch = 0 : i64, scratch_operands = 0 : i64, tpu.core_type = #tpu.core_type<tc>, window_params = [{transform_indices = @transform_0, window_bounds = array<i64: 16, 32>}, {transform_indices = @transform_1, window_bounds = array<i64: 16, 32>}, {pipeline_mode = #tpu.pipeline_mode<synchronous>, transform_indices = @transform_2, window_bounds = array<i64: 32, 32>}, {pipeline_mode = #tpu.pipeline_mode<synchronous>, transform_indices = @transform_3, window_bounds = array<i64: 1, 32>}, {pipeline_mode = #tpu.pipeline_mode<synchronous>, transform_indices = @transform_4, window_bounds = array<i64: 1, 32>}, {pipeline_mode = #tpu.pipeline_mode<synchronous>, transform_indices = @transform_5, window_bounds = array<i64: 32, 64>}, {pipeline_mode = #tpu.pipeline_mode<synchronous>, transform_indices = @transform_6, window_bounds = array<i64: 1, 64>}, {pipeline_mode = #tpu.pipeline_mode<synchronous>, transform_indices = @transform_7, window_bounds = array<i64: 64, 32>}, {pipeline_mode = #tpu.pipeline_mode<synchronous>, transform_indices = @transform_8, window_bounds = array<i64: 1, 32>}, {pipeline_mode = #tpu.pipeline_mode<synchronous>, transform_indices = @transform_9, window_bounds = array<i64: 1, 32>}, {pipeline_mode = #tpu.pipeline_mode<synchronous>, transform_indices = @transform_10, window_bounds = array<i64: 1, 32>}, {transform_indices = @transform_11, window_bounds = array<i64: 16, 32>}]} {
    %c0 = arith.constant 0 : index
    %c0_0 = arith.constant 0 : index
    %0 = vector.load %arg2[%c0, %c0_0] : memref<16x32xf32, #tpu.memory_space<vmem>>, vector<16x32xf32>
    %c0_1 = arith.constant 0 : index
    %c0_2 = arith.constant 0 : index
    %1 = vector.load %arg3[%c0_1, %c0_2] : memref<32x32xf32, #tpu.memory_space<vmem>>, vector<32x32xf32>
    %cst = arith.constant dense<0.000000e+00> : vector<16x32xf32>
    %2 = tpu.matmul %0, %1, %cst {dimension_numbers = #tpu.dot_dimension_numbers<[1], [0], [0], [1], [0, 0, 1, 1], [], []>} : vector<16x32xf32>, vector<32x32xf32>, vector<16x32xf32> -> vector<16x32xf32>
    %c0_3 = arith.constant 0 : index
    %c0_4 = arith.constant 0 : index
    %3 = vector.load %arg1[%c0_3, %c0_4] : memref<16x32xf32, #tpu.memory_space<vmem>>, vector<16x32xf32>
    %4 = arith.addf %3, %2 : vector<16x32xf32>
    %c0_5 = arith.constant 0 : index
    %c0_6 = arith.constant 0 : index
    %5 = vector.load %arg4[%c0_5, %c0_6] : memref<1x32xf32, #tpu.memory_space<vmem>>, vector<1x32xf32>
    %c0_7 = arith.constant 0 : index
    %c0_8 = arith.constant 0 : index
    %6 = vector.load %arg5[%c0_7, %c0_8] : memref<1x32xf32, #tpu.memory_space<vmem>>, vector<1x32xf32>
    %cst_9 = arith.constant dense<0.000000e+00> : vector<16xf32>
    %7 = vector.multi_reduction <add>, %4, %cst_9 [1] : vector<16x32xf32> to vector<16xf32>
    %8 = vector.shape_cast %7 : vector<16xf32> to vector<16x1xf32>
    %cst_10 = arith.constant 3.200000e+01 : f32
    %9 = vector.broadcast %cst_10 : f32 to vector<16x1xf32>
    %10 = arith.divf %8, %9 : vector<16x1xf32>
    %11 = vector.broadcast %10 : vector<16x1xf32> to vector<16x32xf32>
    %12 = arith.subf %4, %11 : vector<16x32xf32>
    %13 = arith.mulf %12, %12 : vector<16x32xf32>
    %cst_11 = arith.constant dense<0.000000e+00> : vector<16xf32>
    %14 = vector.multi_reduction <add>, %13, %cst_11 [1] : vector<16x32xf32> to vector<16xf32>
    %15 = vector.shape_cast %14 : vector<16xf32> to vector<16x1xf32>
    %cst_12 = arith.constant 3.200000e+01 : f32
    %16 = vector.broadcast %cst_12 : f32 to vector<16x1xf32>
    %17 = arith.divf %15, %16 : vector<16x1xf32>
    %18 = vector.broadcast %10 : vector<16x1xf32> to vector<16x32xf32>
    %19 = arith.subf %4, %18 : vector<16x32xf32>
    %cst_13 = arith.constant 9.99999974E-6 : f32
    %20 = vector.broadcast %cst_13 : f32 to vector<16x1xf32>
    %21 = arith.addf %17, %20 : vector<16x1xf32>
    %22 = math.rsqrt %21 : vector<16x1xf32>
    %23 = vector.broadcast %22 : vector<16x1xf32> to vector<16x32xf32>
    %24 = arith.mulf %19, %23 : vector<16x32xf32>
    %25 = vector.broadcast %5 : vector<1x32xf32> to vector<16x32xf32>
    %26 = arith.mulf %24, %25 : vector<16x32xf32>
    %27 = vector.broadcast %6 : vector<1x32xf32> to vector<16x32xf32>
    %28 = arith.addf %26, %27 : vector<16x32xf32>
    %c0_14 = arith.constant 0 : index
    %c0_15 = arith.constant 0 : index
    %29 = vector.load %arg6[%c0_14, %c0_15] : memref<32x64xf32, #tpu.memory_space<vmem>>, vector<32x64xf32>
    %cst_16 = arith.constant dense<0.000000e+00> : vector<16x64xf32>
    %30 = tpu.matmul %28, %29, %cst_16 {dimension_numbers = #tpu.dot_dimension_numbers<[1], [0], [0], [1], [0, 0, 1, 1], [], []>} : vector<16x32xf32>, vector<32x64xf32>, vector<16x64xf32> -> vector<16x64xf32>
    %c0_17 = arith.constant 0 : index
    %c0_18 = arith.constant 0 : index
    %31 = vector.load %arg7[%c0_17, %c0_18] : memref<1x64xf32, #tpu.memory_space<vmem>>, vector<1x64xf32>
    %32 = vector.broadcast %31 : vector<1x64xf32> to vector<16x64xf32>
    %33 = arith.addf %30, %32 : vector<16x64xf32>
    %cst_19 = arith.constant 0.000000e+00 : f32
    %34 = vector.broadcast %cst_19 : f32 to vector<16x64xf32>
    %35 = arith.maximumf %33, %34 : vector<16x64xf32>
    %c0_20 = arith.constant 0 : index
    %c0_21 = arith.constant 0 : index
    %36 = vector.load %arg8[%c0_20, %c0_21] : memref<64x32xf32, #tpu.memory_space<vmem>>, vector<64x32xf32>
    %cst_22 = arith.constant dense<0.000000e+00> : vector<16x32xf32>
    %37 = tpu.matmul %35, %36, %cst_22 {dimension_numbers = #tpu.dot_dimension_numbers<[1], [0], [0], [1], [0, 0, 1, 1], [], []>} : vector<16x64xf32>, vector<64x32xf32>, vector<16x32xf32> -> vector<16x32xf32>
    %c0_23 = arith.constant 0 : index
    %c0_24 = arith.constant 0 : index
    %38 = vector.load %arg9[%c0_23, %c0_24] : memref<1x32xf32, #tpu.memory_space<vmem>>, vector<1x32xf32>
    %39 = vector.broadcast %38 : vector<1x32xf32> to vector<16x32xf32>
    %40 = arith.addf %37, %39 : vector<16x32xf32>
    %41 = arith.addf %28, %40 : vector<16x32xf32>
    %c0_25 = arith.constant 0 : index
    %c0_26 = arith.constant 0 : index
    %42 = vector.load %arg10[%c0_25, %c0_26] : memref<1x32xf32, #tpu.memory_space<vmem>>, vector<1x32xf32>
    %c0_27 = arith.constant 0 : index
    %c0_28 = arith.constant 0 : index
    %43 = vector.load %arg11[%c0_27, %c0_28] : memref<1x32xf32, #tpu.memory_space<vmem>>, vector<1x32xf32>
    %cst_29 = arith.constant dense<0.000000e+00> : vector<16xf32>
    %44 = vector.multi_reduction <add>, %41, %cst_29 [1] : vector<16x32xf32> to vector<16xf32>
    %45 = vector.shape_cast %44 : vector<16xf32> to vector<16x1xf32>
    %cst_30 = arith.constant 3.200000e+01 : f32
    %46 = vector.broadcast %cst_30 : f32 to vector<16x1xf32>
    %47 = arith.divf %45, %46 : vector<16x1xf32>
    %48 = vector.broadcast %47 : vector<16x1xf32> to vector<16x32xf32>
    %49 = arith.subf %41, %48 : vector<16x32xf32>
    %50 = arith.mulf %49, %49 : vector<16x32xf32>
    %cst_31 = arith.constant dense<0.000000e+00> : vector<16xf32>
    %51 = vector.multi_reduction <add>, %50, %cst_31 [1] : vector<16x32xf32> to vector<16xf32>
    %52 = vector.shape_cast %51 : vector<16xf32> to vector<16x1xf32>
    %cst_32 = arith.constant 3.200000e+01 : f32
    %53 = vector.broadcast %cst_32 : f32 to vector<16x1xf32>
    %54 = arith.divf %52, %53 : vector<16x1xf32>
    %55 = vector.broadcast %47 : vector<16x1xf32> to vector<16x32xf32>
    %56 = arith.subf %41, %55 : vector<16x32xf32>
    %cst_33 = arith.constant 9.99999974E-6 : f32
    %57 = vector.broadcast %cst_33 : f32 to vector<16x1xf32>
    %58 = arith.addf %54, %57 : vector<16x1xf32>
    %59 = math.rsqrt %58 : vector<16x1xf32>
    %60 = vector.broadcast %59 : vector<16x1xf32> to vector<16x32xf32>
    %61 = arith.mulf %56, %60 : vector<16x32xf32>
    %62 = vector.broadcast %42 : vector<1x32xf32> to vector<16x32xf32>
    %63 = arith.mulf %61, %62 : vector<16x32xf32>
    %64 = vector.broadcast %43 : vector<1x32xf32> to vector<16x32xf32>
    %65 = arith.addf %63, %64 : vector<16x32xf32>
    %c0_34 = arith.constant 0 : index
    %c0_35 = arith.constant 0 : index
    %66 = vector.load %arg12[%c0_34, %c0_35] : memref<16x32xf32, #tpu.memory_space<vmem>>, vector<16x32xf32>
    tpu.vector_store %arg12[%c0_34, %c0_35], %65 {strides = array<i32>} : memref<16x32xf32, #tpu.memory_space<vmem>>, vector<16x32xf32>,
    return
  }
  func.func @transform_0(%arg0: i32) -> (i32, i32) {
    %c0_i32 = arith.constant 0 : i32
    %c0_i32_0 = arith.constant 0 : i32
    return %arg0, %c0_i32 : i32, i32
  }
  func.func @transform_1(%arg0: i32) -> (i32, i32) {
    %c0_i32 = arith.constant 0 : i32
    %c0_i32_0 = arith.constant 0 : i32
    return %arg0, %c0_i32 : i32, i32
  }
  func.func @transform_2(%arg0: i32) -> (i32, i32) {
    %c0_i32 = arith.constant 0 : i32
    %c0_i32_0 = arith.constant 0 : i32
    %c0_i32_1 = arith.constant 0 : i32
    return %c0_i32, %c0_i32_0 : i32, i32
  }
  func.func @transform_3(%arg0: i32) -> (i32, i32) {
    %c0_i32 = arith.constant 0 : i32
    %c0_i32_0 = arith.constant 0 : i32
    %c0_i32_1 = arith.constant 0 : i32
    return %c0_i32, %c0_i32_0 : i32, i32
  }
  func.func @transform_4(%arg0: i32) -> (i32, i32) {
    %c0_i32 = arith.constant 0 : i32
    %c0_i32_0 = arith.constant 0 : i32
    %c0_i32_1 = arith.constant 0 : i32
    return %c0_i32, %c0_i32_0 : i32, i32
  }
  func.func @transform_5(%arg0: i32) -> (i32, i32) {
    %c0_i32 = arith.constant 0 : i32
    %c0_i32_0 = arith.constant 0 : i32
    %c0_i32_1 = arith.constant 0 : i32
    return %c0_i32, %c0_i32_0 : i32, i32
  }
  func.func @transform_6(%arg0: i32) -> (i32, i32) {
    %c0_i32 = arith.constant 0 : i32
    %c0_i32_0 = arith.constant 0 : i32
    %c0_i32_1 = arith.constant 0 : i32
    return %c0_i32, %c0_i32_0 : i32, i32
  }
  func.func @transform_7(%arg0: i32) -> (i32, i32) {
    %c0_i32 = arith.constant 0 : i32
    %c0_i32_0 = arith.constant 0 : i32
    %c0_i32_1 = arith.constant 0 : i32
    return %c0_i32, %c0_i32_0 : i32, i32
  }
  func.func @transform_8(%arg0: i32) -> (i32, i32) {
    %c0_i32 = arith.constant 0 : i32
    %c0_i32_0 = arith.constant 0 : i32
    %c0_i32_1 = arith.constant 0 : i32
    return %c0_i32, %c0_i32_0 : i32, i32
  }
  func.func @transform_9(%arg0: i32) -> (i32, i32) {
    %c0_i32 = arith.constant 0 : i32
    %c0_i32_0 = arith.constant 0 : i32
    %c0_i32_1 = arith.constant 0 : i32
    return %c0_i32, %c0_i32_0 : i32, i32
  }
  func.func @transform_10(%arg0: i32) -> (i32, i32) {
    %c0_i32 = arith.constant 0 : i32
    %c0_i32_0 = arith.constant 0 : i32
    %c0_i32_1 = arith.constant 0 : i32
    return %c0_i32, %c0_i32_0 : i32, i32
  }
  func.func @transform_11(%arg0: i32) -> (i32, i32) {
    %c0_i32 = arith.constant 0 : i32
    %c0_i32_0 = arith.constant 0 : i32
    return %arg0, %c0_i32 : i32, i32
  }
}

module attributes {stable_mosaic.version = 11 : i64} {
  func.func @_qkv_kernel(%arg0: i32, %arg1: memref<16x32xf32, #tpu.memory_space<vmem>>, %arg2: memref<32x32xf32, #tpu.memory_space<vmem>>, %arg3: memref<32x32xf32, #tpu.memory_space<vmem>>, %arg4: memref<32x32xf32, #tpu.memory_space<vmem>>, %arg5: memref<16x32xf32, #tpu.memory_space<vmem>>, %arg6: memref<16x32xf32, #tpu.memory_space<vmem>>, %arg7: memref<16x32xf32, #tpu.memory_space<vmem>>) attributes {dimension_semantics = [#tpu.dimension_semantics<parallel>], iteration_bounds = array<i64: 1>, scalar_prefetch = 0 : i64, scratch_operands = 0 : i64, tpu.core_type = #tpu.core_type<tc>, window_params = [{transform_indices = @transform_0, window_bounds = array<i64: 16, 32>}, {pipeline_mode = #tpu.pipeline_mode<synchronous>, transform_indices = @transform_1, window_bounds = array<i64: 32, 32>}, {pipeline_mode = #tpu.pipeline_mode<synchronous>, transform_indices = @transform_2, window_bounds = array<i64: 32, 32>}, {pipeline_mode = #tpu.pipeline_mode<synchronous>, transform_indices = @transform_3, window_bounds = array<i64: 32, 32>}, {transform_indices = @transform_4, window_bounds = array<i64: 16, 32>}, {transform_indices = @transform_5, window_bounds = array<i64: 16, 32>}, {transform_indices = @transform_6, window_bounds = array<i64: 16, 32>}]} {
    %c0 = arith.constant 0 : index
    %c0_0 = arith.constant 0 : index
    %0 = vector.load %arg1[%c0, %c0_0] : memref<16x32xf32, #tpu.memory_space<vmem>>, vector<16x32xf32>
    %c0_1 = arith.constant 0 : index
    %c0_2 = arith.constant 0 : index
    %1 = vector.load %arg2[%c0_1, %c0_2] : memref<32x32xf32, #tpu.memory_space<vmem>>, vector<32x32xf32>
    %cst = arith.constant dense<0.000000e+00> : vector<16x32xf32>
    %2 = tpu.matmul %0, %1, %cst {dimension_numbers = #tpu.dot_dimension_numbers<[1], [0], [0], [1], [0, 0, 1, 1], [], []>} : vector<16x32xf32>, vector<32x32xf32>, vector<16x32xf32> -> vector<16x32xf32>
    %c0_3 = arith.constant 0 : index
    %c0_4 = arith.constant 0 : index
    %3 = vector.load %arg5[%c0_3, %c0_4] : memref<16x32xf32, #tpu.memory_space<vmem>>, vector<16x32xf32>
    tpu.vector_store %arg5[%c0_3, %c0_4], %2 {strides = array<i32>} : memref<16x32xf32, #tpu.memory_space<vmem>>, vector<16x32xf32>,
    %c0_5 = arith.constant 0 : index
    %c0_6 = arith.constant 0 : index
    %4 = vector.load %arg3[%c0_5, %c0_6] : memref<32x32xf32, #tpu.memory_space<vmem>>, vector<32x32xf32>
    %cst_7 = arith.constant dense<0.000000e+00> : vector<16x32xf32>
    %5 = tpu.matmul %0, %4, %cst_7 {dimension_numbers = #tpu.dot_dimension_numbers<[1], [0], [0], [1], [0, 0, 1, 1], [], []>} : vector<16x32xf32>, vector<32x32xf32>, vector<16x32xf32> -> vector<16x32xf32>
    %c0_8 = arith.constant 0 : index
    %c0_9 = arith.constant 0 : index
    %6 = vector.load %arg6[%c0_8, %c0_9] : memref<16x32xf32, #tpu.memory_space<vmem>>, vector<16x32xf32>
    tpu.vector_store %arg6[%c0_8, %c0_9], %5 {strides = array<i32>} : memref<16x32xf32, #tpu.memory_space<vmem>>, vector<16x32xf32>,
    %c0_10 = arith.constant 0 : index
    %c0_11 = arith.constant 0 : index
    %7 = vector.load %arg4[%c0_10, %c0_11] : memref<32x32xf32, #tpu.memory_space<vmem>>, vector<32x32xf32>
    %cst_12 = arith.constant dense<0.000000e+00> : vector<16x32xf32>
    %8 = tpu.matmul %0, %7, %cst_12 {dimension_numbers = #tpu.dot_dimension_numbers<[1], [0], [0], [1], [0, 0, 1, 1], [], []>} : vector<16x32xf32>, vector<32x32xf32>, vector<16x32xf32> -> vector<16x32xf32>
    %c0_13 = arith.constant 0 : index
    %c0_14 = arith.constant 0 : index
    %9 = vector.load %arg7[%c0_13, %c0_14] : memref<16x32xf32, #tpu.memory_space<vmem>>, vector<16x32xf32>
    tpu.vector_store %arg7[%c0_13, %c0_14], %8 {strides = array<i32>} : memref<16x32xf32, #tpu.memory_space<vmem>>, vector<16x32xf32>,
    return
  }
  func.func @transform_0(%arg0: i32) -> (i32, i32) {
    %c0_i32 = arith.constant 0 : i32
    %c0_i32_0 = arith.constant 0 : i32
    return %arg0, %c0_i32 : i32, i32
  }
  func.func @transform_1(%arg0: i32) -> (i32, i32) {
    %c0_i32 = arith.constant 0 : i32
    %c0_i32_0 = arith.constant 0 : i32
    %c0_i32_1 = arith.constant 0 : i32
    return %c0_i32, %c0_i32_0 : i32, i32
  }
  func.func @transform_2(%arg0: i32) -> (i32, i32) {
    %c0_i32 = arith.constant 0 : i32
    %c0_i32_0 = arith.constant 0 : i32
    %c0_i32_1 = arith.constant 0 : i32
    return %c0_i32, %c0_i32_0 : i32, i32
  }
  func.func @transform_3(%arg0: i32) -> (i32, i32) {
    %c0_i32 = arith.constant 0 : i32
    %c0_i32_0 = arith.constant 0 : i32
    %c0_i32_1 = arith.constant 0 : i32
    return %c0_i32, %c0_i32_0 : i32, i32
  }
  func.func @transform_4(%arg0: i32) -> (i32, i32) {
    %c0_i32 = arith.constant 0 : i32
    %c0_i32_0 = arith.constant 0 : i32
    return %arg0, %c0_i32 : i32, i32
  }
  func.func @transform_5(%arg0: i32) -> (i32, i32) {
    %c0_i32 = arith.constant 0 : i32
    %c0_i32_0 = arith.constant 0 : i32
    return %arg0, %c0_i32 : i32, i32
  }
  func.func @transform_6(%arg0: i32) -> (i32, i32) {
    %c0_i32 = arith.constant 0 : i32
    %c0_i32_0 = arith.constant 0 : i32
    return %arg0, %c0_i32 : i32, i32
  }
}

module attributes {stable_mosaic.version = 11 : i64} {
  func.func @_post_attn_ffn_kernel(%arg0: i32, %arg1: memref<16x32xf32, #tpu.memory_space<vmem>>, %arg2: memref<16x32xf32, #tpu.memory_space<vmem>>, %arg3: memref<32x32xf32, #tpu.memory_space<vmem>>, %arg4: memref<1x32xf32, #tpu.memory_space<vmem>>, %arg5: memref<1x32xf32, #tpu.memory_space<vmem>>, %arg6: memref<32x64xf32, #tpu.memory_space<vmem>>, %arg7: memref<1x64xf32, #tpu.memory_space<vmem>>, %arg8: memref<64x32xf32, #tpu.memory_space<vmem>>, %arg9: memref<1x32xf32, #tpu.memory_space<vmem>>, %arg10: memref<1x32xf32, #tpu.memory_space<vmem>>, %arg11: memref<1x32xf32, #tpu.memory_space<vmem>>, %arg12: memref<16x32xf32, #tpu.memory_space<vmem>>) attributes {dimension_semantics = [#tpu.dimension_semantics<parallel>], iteration_bounds = array<i64: 1>, scalar_prefetch = 0 : i64, scratch_operands = 0 : i64, tpu.core_type = #tpu.core_type<tc>, window_params = [{transform_indices = @transform_0, window_bounds = array<i64: 16, 32>}, {transform_indices = @transform_1, window_bounds = array<i64: 16, 32>}, {pipeline_mode = #tpu.pipeline_mode<synchronous>, transform_indices = @transform_2, window_bounds = array<i64: 32, 32>}, {pipeline_mode = #tpu.pipeline_mode<synchronous>, transform_indices = @transform_3, window_bounds = array<i64: 1, 32>}, {pipeline_mode = #tpu.pipeline_mode<synchronous>, transform_indices = @transform_4, window_bounds = array<i64: 1, 32>}, {pipeline_mode = #tpu.pipeline_mode<synchronous>, transform_indices = @transform_5, window_bounds = array<i64: 32, 64>}, {pipeline_mode = #tpu.pipeline_mode<synchronous>, transform_indices = @transform_6, window_bounds = array<i64: 1, 64>}, {pipeline_mode = #tpu.pipeline_mode<synchronous>, transform_indices = @transform_7, window_bounds = array<i64: 64, 32>}, {pipeline_mode = #tpu.pipeline_mode<synchronous>, transform_indices = @transform_8, window_bounds = array<i64: 1, 32>}, {pipeline_mode = #tpu.pipeline_mode<synchronous>, transform_indices = @transform_9, window_bounds = array<i64: 1, 32>}, {pipeline_mode = #tpu.pipeline_mode<synchronous>, transform_indices = @transform_10, window_bounds = array<i64: 1, 32>}, {transform_indices = @transform_11, window_bounds = array<i64: 16, 32>}]} {
    %c0 = arith.constant 0 : index
    %c0_0 = arith.constant 0 : index
    %0 = vector.load %arg2[%c0, %c0_0] : memref<16x32xf32, #tpu.memory_space<vmem>>, vector<16x32xf32>
    %c0_1 = arith.constant 0 : index
    %c0_2 = arith.constant 0 : index
    %1 = vector.load %arg3[%c0_1, %c0_2] : memref<32x32xf32, #tpu.memory_space<vmem>>, vector<32x32xf32>
    %cst = arith.constant dense<0.000000e+00> : vector<16x32xf32>
    %2 = tpu.matmul %0, %1, %cst {dimension_numbers = #tpu.dot_dimension_numbers<[1], [0], [0], [1], [0, 0, 1, 1], [], []>} : vector<16x32xf32>, vector<32x32xf32>, vector<16x32xf32> -> vector<16x32xf32>
    %c0_3 = arith.constant 0 : index
    %c0_4 = arith.constant 0 : index
    %3 = vector.load %arg1[%c0_3, %c0_4] : memref<16x32xf32, #tpu.memory_space<vmem>>, vector<16x32xf32>
    %4 = arith.addf %3, %2 : vector<16x32xf32>
    %c0_5 = arith.constant 0 : index
    %c0_6 = arith.constant 0 : index
    %5 = vector.load %arg4[%c0_5, %c0_6] : memref<1x32xf32, #tpu.memory_space<vmem>>, vector<1x32xf32>
    %c0_7 = arith.constant 0 : index
    %c0_8 = arith.constant 0 : index
    %6 = vector.load %arg5[%c0_7, %c0_8] : memref<1x32xf32, #tpu.memory_space<vmem>>, vector<1x32xf32>
    %cst_9 = arith.constant dense<0.000000e+00> : vector<16xf32>
    %7 = vector.multi_reduction <add>, %4, %cst_9 [1] : vector<16x32xf32> to vector<16xf32>
    %8 = vector.shape_cast %7 : vector<16xf32> to vector<16x1xf32>
    %cst_10 = arith.constant 3.200000e+01 : f32
    %9 = vector.broadcast %cst_10 : f32 to vector<16x1xf32>
    %10 = arith.divf %8, %9 : vector<16x1xf32>
    %11 = vector.broadcast %10 : vector<16x1xf32> to vector<16x32xf32>
    %12 = arith.subf %4, %11 : vector<16x32xf32>
    %13 = arith.mulf %12, %12 : vector<16x32xf32>
    %cst_11 = arith.constant dense<0.000000e+00> : vector<16xf32>
    %14 = vector.multi_reduction <add>, %13, %cst_11 [1] : vector<16x32xf32> to vector<16xf32>
    %15 = vector.shape_cast %14 : vector<16xf32> to vector<16x1xf32>
    %cst_12 = arith.constant 3.200000e+01 : f32
    %16 = vector.broadcast %cst_12 : f32 to vector<16x1xf32>
    %17 = arith.divf %15, %16 : vector<16x1xf32>
    %18 = vector.broadcast %10 : vector<16x1xf32> to vector<16x32xf32>
    %19 = arith.subf %4, %18 : vector<16x32xf32>
    %cst_13 = arith.constant 9.99999974E-6 : f32
    %20 = vector.broadcast %cst_13 : f32 to vector<16x1xf32>
    %21 = arith.addf %17, %20 : vector<16x1xf32>
    %22 = math.rsqrt %21 : vector<16x1xf32>
    %23 = vector.broadcast %22 : vector<16x1xf32> to vector<16x32xf32>
    %24 = arith.mulf %19, %23 : vector<16x32xf32>
    %25 = vector.broadcast %5 : vector<1x32xf32> to vector<16x32xf32>
    %26 = arith.mulf %24, %25 : vector<16x32xf32>
    %27 = vector.broadcast %6 : vector<1x32xf32> to vector<16x32xf32>
    %28 = arith.addf %26, %27 : vector<16x32xf32>
    %c0_14 = arith.constant 0 : index
    %c0_15 = arith.constant 0 : index
    %29 = vector.load %arg6[%c0_14, %c0_15] : memref<32x64xf32, #tpu.memory_space<vmem>>, vector<32x64xf32>
    %cst_16 = arith.constant dense<0.000000e+00> : vector<16x64xf32>
    %30 = tpu.matmul %28, %29, %cst_16 {dimension_numbers = #tpu.dot_dimension_numbers<[1], [0], [0], [1], [0, 0, 1, 1], [], []>} : vector<16x32xf32>, vector<32x64xf32>, vector<16x64xf32> -> vector<16x64xf32>
    %c0_17 = arith.constant 0 : index
    %c0_18 = arith.constant 0 : index
    %31 = vector.load %arg7[%c0_17, %c0_18] : memref<1x64xf32, #tpu.memory_space<vmem>>, vector<1x64xf32>
    %32 = vector.broadcast %31 : vector<1x64xf32> to vector<16x64xf32>
    %33 = arith.addf %30, %32 : vector<16x64xf32>
    %cst_19 = arith.constant 0.000000e+00 : f32
    %34 = vector.broadcast %cst_19 : f32 to vector<16x64xf32>
    %35 = arith.maximumf %33, %34 : vector<16x64xf32>
    %c0_20 = arith.constant 0 : index
    %c0_21 = arith.constant 0 : index
    %36 = vector.load %arg8[%c0_20, %c0_21] : memref<64x32xf32, #tpu.memory_space<vmem>>, vector<64x32xf32>
    %cst_22 = arith.constant dense<0.000000e+00> : vector<16x32xf32>
    %37 = tpu.matmul %35, %36, %cst_22 {dimension_numbers = #tpu.dot_dimension_numbers<[1], [0], [0], [1], [0, 0, 1, 1], [], []>} : vector<16x64xf32>, vector<64x32xf32>, vector<16x32xf32> -> vector<16x32xf32>
    %c0_23 = arith.constant 0 : index
    %c0_24 = arith.constant 0 : index
    %38 = vector.load %arg9[%c0_23, %c0_24] : memref<1x32xf32, #tpu.memory_space<vmem>>, vector<1x32xf32>
    %39 = vector.broadcast %38 : vector<1x32xf32> to vector<16x32xf32>
    %40 = arith.addf %37, %39 : vector<16x32xf32>
    %41 = arith.addf %28, %40 : vector<16x32xf32>
    %c0_25 = arith.constant 0 : index
    %c0_26 = arith.constant 0 : index
    %42 = vector.load %arg10[%c0_25, %c0_26] : memref<1x32xf32, #tpu.memory_space<vmem>>, vector<1x32xf32>
    %c0_27 = arith.constant 0 : index
    %c0_28 = arith.constant 0 : index
    %43 = vector.load %arg11[%c0_27, %c0_28] : memref<1x32xf32, #tpu.memory_space<vmem>>, vector<1x32xf32>
    %cst_29 = arith.constant dense<0.000000e+00> : vector<16xf32>
    %44 = vector.multi_reduction <add>, %41, %cst_29 [1] : vector<16x32xf32> to vector<16xf32>
    %45 = vector.shape_cast %44 : vector<16xf32> to vector<16x1xf32>
    %cst_30 = arith.constant 3.200000e+01 : f32
    %46 = vector.broadcast %cst_30 : f32 to vector<16x1xf32>
    %47 = arith.divf %45, %46 : vector<16x1xf32>
    %48 = vector.broadcast %47 : vector<16x1xf32> to vector<16x32xf32>
    %49 = arith.subf %41, %48 : vector<16x32xf32>
    %50 = arith.mulf %49, %49 : vector<16x32xf32>
    %cst_31 = arith.constant dense<0.000000e+00> : vector<16xf32>
    %51 = vector.multi_reduction <add>, %50, %cst_31 [1] : vector<16x32xf32> to vector<16xf32>
    %52 = vector.shape_cast %51 : vector<16xf32> to vector<16x1xf32>
    %cst_32 = arith.constant 3.200000e+01 : f32
    %53 = vector.broadcast %cst_32 : f32 to vector<16x1xf32>
    %54 = arith.divf %52, %53 : vector<16x1xf32>
    %55 = vector.broadcast %47 : vector<16x1xf32> to vector<16x32xf32>
    %56 = arith.subf %41, %55 : vector<16x32xf32>
    %cst_33 = arith.constant 9.99999974E-6 : f32
    %57 = vector.broadcast %cst_33 : f32 to vector<16x1xf32>
    %58 = arith.addf %54, %57 : vector<16x1xf32>
    %59 = math.rsqrt %58 : vector<16x1xf32>
    %60 = vector.broadcast %59 : vector<16x1xf32> to vector<16x32xf32>
    %61 = arith.mulf %56, %60 : vector<16x32xf32>
    %62 = vector.broadcast %42 : vector<1x32xf32> to vector<16x32xf32>
    %63 = arith.mulf %61, %62 : vector<16x32xf32>
    %64 = vector.broadcast %43 : vector<1x32xf32> to vector<16x32xf32>
    %65 = arith.addf %63, %64 : vector<16x32xf32>
    %c0_34 = arith.constant 0 : index
    %c0_35 = arith.constant 0 : index
    %66 = vector.load %arg12[%c0_34, %c0_35] : memref<16x32xf32, #tpu.memory_space<vmem>>, vector<16x32xf32>
    tpu.vector_store %arg12[%c0_34, %c0_35], %65 {strides = array<i32>} : memref<16x32xf32, #tpu.memory_space<vmem>>, vector<16x32xf32>,
    return
  }
  func.func @transform_0(%arg0: i32) -> (i32, i32) {
    %c0_i32 = arith.constant 0 : i32
    %c0_i32_0 = arith.constant 0 : i32
    return %arg0, %c0_i32 : i32, i32
  }
  func.func @transform_1(%arg0: i32) -> (i32, i32) {
    %c0_i32 = arith.constant 0 : i32
    %c0_i32_0 = arith.constant 0 : i32
    return %arg0, %c0_i32 : i32, i32
  }
  func.func @transform_2(%arg0: i32) -> (i32, i32) {
    %c0_i32 = arith.constant 0 : i32
    %c0_i32_0 = arith.constant 0 : i32
    %c0_i32_1 = arith.constant 0 : i32
    return %c0_i32, %c0_i32_0 : i32, i32
  }
  func.func @transform_3(%arg0: i32) -> (i32, i32) {
    %c0_i32 = arith.constant 0 : i32
    %c0_i32_0 = arith.constant 0 : i32
    %c0_i32_1 = arith.constant 0 : i32
    return %c0_i32, %c0_i32_0 : i32, i32
  }
  func.func @transform_4(%arg0: i32) -> (i32, i32) {
    %c0_i32 = arith.constant 0 : i32
    %c0_i32_0 = arith.constant 0 : i32
    %c0_i32_1 = arith.constant 0 : i32
    return %c0_i32, %c0_i32_0 : i32, i32
  }
  func.func @transform_5(%arg0: i32) -> (i32, i32) {
    %c0_i32 = arith.constant 0 : i32
    %c0_i32_0 = arith.constant 0 : i32
    %c0_i32_1 = arith.constant 0 : i32
    return %c0_i32, %c0_i32_0 : i32, i32
  }
  func.func @transform_6(%arg0: i32) -> (i32, i32) {
    %c0_i32 = arith.constant 0 : i32
    %c0_i32_0 = arith.constant 0 : i32
    %c0_i32_1 = arith.constant 0 : i32
    return %c0_i32, %c0_i32_0 : i32, i32
  }
  func.func @transform_7(%arg0: i32) -> (i32, i32) {
    %c0_i32 = arith.constant 0 : i32
    %c0_i32_0 = arith.constant 0 : i32
    %c0_i32_1 = arith.constant 0 : i32
    return %c0_i32, %c0_i32_0 : i32, i32
  }
  func.func @transform_8(%arg0: i32) -> (i32, i32) {
    %c0_i32 = arith.constant 0 : i32
    %c0_i32_0 = arith.constant 0 : i32
    %c0_i32_1 = arith.constant 0 : i32
    return %c0_i32, %c0_i32_0 : i32, i32
  }
  func.func @transform_9(%arg0: i32) -> (i32, i32) {
    %c0_i32 = arith.constant 0 : i32
    %c0_i32_0 = arith.constant 0 : i32
    %c0_i32_1 = arith.constant 0 : i32
    return %c0_i32, %c0_i32_0 : i32, i32
  }
  func.func @transform_10(%arg0: i32) -> (i32, i32) {
    %c0_i32 = arith.constant 0 : i32
    %c0_i32_0 = arith.constant 0 : i32
    %c0_i32_1 = arith.constant 0 : i32
    return %c0_i32, %c0_i32_0 : i32, i32
  }
  func.func @transform_11(%arg0: i32) -> (i32, i32) {
    %c0_i32 = arith.constant 0 : i32
    %c0_i32_0 = arith.constant 0 : i32
    return %arg0, %c0_i32 : i32, i32
  }
}

</mosaic_0001>

<bundles_post_ra>
// kernel: _lambda_.9
= control target key start
LH: loop header
LB: loop body
LE: loop exit
PB: predicated region body
PF: predicated region fallthrough
CT: control target
= control target key end

     0   :  { %vm26_vm0 = vcmask 261120   ;;  %s448_s1 = inlined_call_operand.vmem [shape: f32[32,32], index: 1, kind: input, shape index: {}]   ;;  %s449_s2 = inlined_call_operand.vmem [shape: f32[32,32], index: 2, kind: input, shape index: {}]   ;;  %s450_s0 = inlined_call_operand.vmem [shape: f32[16,32], index: 0, kind: input, shape index: {}]   ;;  %s451_s3 = inlined_call_operand.vmem [shape: f32[32,32], index: 3, kind: input, shape index: {}]   ;;  %s452_s4 = inlined_call_operand.vmem [shape: f32[16,32], index: 4, kind: output, shape index: {0}]   ;;  %s453_s5 = inlined_call_operand.vmem [shape: f32[16,32], index: 5, kind: output, shape index: {1}]   ;;  %s454_s6 = inlined_call_operand.vmem [shape: f32[16,32], index: 6, kind: output, shape index: {2}]  }
   0x1   :  { %v25_v0 = vld [vmem:[%s448_s1 + $0x18] sm:$0xff]  ;;  %v24_v1 = vld [vmem:[%s448_s1 + $0x10] sm:$0xff]  ;;  %v20_v3 = vld [vmem:[%s450_s0] sm:$0xff] }
   0x2   :  { %308 = vmatprep.subr.mxu0 %v25_v0  ;;  %v113_v2 = vld [vmem:[%s449_s2 + $0x18] sm:$0xff]  ;;  %v23_v4 = vld [vmem:[%s448_s1 + $0x8] sm:$0xff]  ;;  %v112_v5 = vld [vmem:[%s449_s2 + $0x10] sm:$0xff]  ;;  %316 = vmatprep.mubr.msk.f32.mxu0 %vm26_vm0, %v20_v3 }
   0x3   :  { %309 = vmatpush3.msra.mxu0 %v25_v0  ;;  %319 = vmatprep.subr.mxu1 %v113_v2  ;;  %v22_v6 = vld [vmem:[%s448_s1] sm:$0xff]  ;;  %v111_v7 = vld [vmem:[%s449_s2 + $0x8] sm:$0xff]  ;;  %v194_v9 = vld [vmem:[%s451_s3 + $0x18] sm:$0xff] }
   0x4   :  { %310 = vmatprep.subr.mxu0 %v24_v1  ;;  %320 = vmatpush3.msra.mxu1 %v113_v2  ;;  %v21_v8 = vld [vmem:[%s450_s0 + $0x8] sm:$0xff]  ;;  %v110_v10 = vld [vmem:[%s449_s2] sm:$0xff]  ;;  %v193_v11 = vld [vmem:[%s451_s3 + $0x10] sm:$0xff] }
   0x5   :  { %311 = vmatpush3.msra.mxu0 %v24_v1  ;;  %321 = vmatprep.subr.mxu1 %v112_v5  ;;  %v192_v12 = vld [vmem:[%s451_s3 + $0x8] sm:$0xff]  ;;  %v191_v13 = vld [vmem:[%s451_s3] sm:$0xff] }
   0x6   :  { %312 = vmatprep.subr.mxu0 %v23_v4  ;;  %322 = vmatpush3.msra.mxu1 %v112_v5 }
   0x7   :  { %313 = vmatpush3.msra.mxu0 %v23_v4  ;;  %323 = vmatprep.subr.mxu1 %v111_v7 }
   0x8   :  { %314 = vmatprep.subr.mxu0 %v22_v6  ;;  %324 = vmatpush3.msra.mxu1 %v111_v7 }
   0x9   :  { %315 = vmatpush3.msra.mxu0 %v22_v6  ;;  %325 = vmatprep.subr.mxu1 %v110_v10 }
   0xa   :  { %317 = vmatmul.mubr.msk.f32.vlgmr.msra.gmra.mxu0 %vm26_vm0, %v21_v8  ;;  %330 = vmatprep.subr.mxu0 %v194_v9 }
   0xb   :  { %331 = vmatpush3.msra.mxu0 %v194_v9  ;;  %326 = vmatpush3.msra.mxu1 %v110_v10 }
   0xc   :  { %332 = vmatprep.subr.mxu0 %v193_v11  ;;  %327 = vmatprep.mubr.msk.f32.mxu1 %vm26_vm0, %v20_v3 }
   0xd   :  { %333 = vmatpush3.msra.mxu0 %v193_v11  ;;  %328 = vmatmul.mubr.msk.f32.vlgmr.msra.gmra.mxu1 %vm26_vm0, %v21_v8 }
   0xe   :  { %334 = vmatprep.subr.mxu0 %v192_v12  ;;  %338 = vmatprep.mubr.msk.f32.mxu0 %vm26_vm0, %v20_v3 }
   0xf   :  { %335 = vmatpush3.msra.mxu0 %v192_v12 }
  0x10   :  { %336 = vmatprep.subr.mxu0 %v191_v13 }
  0x11   :  { %337 = vmatpush3.msra.mxu0 %v191_v13 }
  0x12   :  { %339 = vmatmul.mubr.msk.f32.vlgmr.msra.gmra.mxu0 %vm26_vm0, %v21_v8 }
  0xca   :  { %v318_v14 = vpop.f32.mrf.mxu0 }
  0xcb   :  { %109 = vst.msk [vmem:[%s452_s4 + $0x8] sm:$0xff] %vm26_vm0, %v318_v14 }
  0xcc   :  { %v99_v15 = vpop.f32.mrf.mxu0 }
  0xcd   :  { %108 = vst.msk [vmem:[%s452_s4] sm:$0xff] %vm26_vm0, %v99_v15  ;;  %v329_v16 = vpop.f32.mrf.mxu1 }
  0xce   :  { %190 = vst.msk [vmem:[%s453_s5 + $0x8] sm:$0xff] %vm26_vm0, %v329_v16 }
  0xcf   :  { %v180_v17 = vpop.f32.mrf.mxu1 }
  0xd0   :  { %189 = vst.msk [vmem:[%s453_s5] sm:$0xff] %vm26_vm0, %v180_v17 }
  0xd2   :  { %v340_v18 = vpop.f32.mrf.mxu0 }
  0xd3   :  { %271 = vst.msk [vmem:[%s454_s6 + $0x8] sm:$0xff] %vm26_vm0, %v340_v18 }
  0xd4   :  { %v261_v19 = vpop.f32.mrf.mxu0 }
  0xd5   :  { %270 = vst.msk [vmem:[%s454_s6] sm:$0xff] %vm26_vm0, %v261_v19 }

// kernel: _lambda_.6
= control target key start
LH: loop header
LB: loop body
LE: loop exit
PB: predicated region body
PF: predicated region fallthrough
CT: control target
= control target key end

     0   :  { %12 = vsyncpa [#allocation3], 0  ;;  %s538_s0 = inlined_call_operand.vmem [shape: f32[16,32], index: 0, kind: input, shape index: {}]   ;;  %s539_s1 = inlined_call_operand.hbm [shape: f32[32,32], index: 1, kind: input, shape index: {}]   ;;  %s540_s2 = inlined_call_operand.hbm [shape: f32[32,32], index: 2, kind: input, shape index: {}]   ;;  %s541_s3 = inlined_call_operand.hbm [shape: f32[32,32], index: 3, kind: input, shape index: {}]   ;;  %s542_s4 = inlined_call_operand.vmem [shape: f32[16,32], index: 4, kind: output, shape index: {0}]   ;;  %s543_s5 = inlined_call_operand.vmem [shape: f32[16,32], index: 5, kind: output, shape index: {1}]   ;;  %s544_s6 = inlined_call_operand.vmem [shape: f32[16,32], index: 6, kind: output, shape index: {2}]  }
   0x1   :  { %13 = vsyncpa [#allocation5], 0  ;;  %s453_s21 = smov [#allocation4]   ;;  %s454_s23 = smov [#allocation2]  }
   0x2   :  { %s33_s22 = sshll.u32 %s453_s21, 4  ;;  %s21_s24 = sshll.u32 %s454_s23, 4  ;;  %s34_s22 = int_to_ptr.vmem [resolvable:$true] %s33_s22  ;;  %s22_s24 = int_to_ptr.vmem [resolvable:$true] %s21_s24 }
   0x3   :  { %s397_s25 = scalar_lea.vmem %s34_s22, 512  ;;  %p402_p1 = scmp.lt.s32.totalorder %s34_s22, %s34_s22 }
   0x4   :  { %p398_p0 = scmp.ne.s32.totalorder %s34_s22, %s397_s25  ;;  %p403_p2 = scmp.lt.s32.totalorder %s397_s25, %s397_s25 }
   0x6   :  { %p404_p3 = por %p403_p2, %p402_p1 }
   0x8   :  { %p405_p4 = pnand %p404_p3, %p398_p0 }
   0xa   :  { %408 = shalt.err (!%p405_p4)
}
   0xb   :  { %s455_s26 = smov 128   ;;  %s456_s27 = smov 8  }
   0xc   :  { %39 = dma.hbm_to_vmem [thread:$0]  %s540_s2, 512, %s34_s22, [#allocation5], %s455_s26, %s455_s26, %s456_s27  }
   0xd   :  { %s417_s30 = scalar_lea.vmem %s22_s24, 512  ;;  %p422_p6 = scmp.lt.s32.totalorder %s22_s24, %s22_s24 }
   0xe   :  { %p418_p5 = scmp.ne.s32.totalorder %s22_s24, %s417_s30  ;;  %p423_p7 = scmp.lt.s32.totalorder %s417_s30, %s417_s30 }
  0x10   :  { %p424_p8 = por %p423_p7, %p422_p6 }
  0x12   :  { %p425_p9 = pnand %p424_p8, %p418_p5 }
  0x14   :  { %428 = shalt.err (!%p425_p9)
}
  0x15   :  { %27 = dma.hbm_to_vmem [thread:$0]  %s539_s1, 512, %s22_s24, [#allocation3], %s455_s26, %s455_s26, %s456_s27  }
  0x16   :  { %s457_s9 = smov [#allocation6]  }
  0x17   :  { %s45_s10 = sshll.u32 %s457_s9, 4  ;;  %s46_s10 = int_to_ptr.vmem [resolvable:$true] %s45_s10 }
  0x18   :  { %s437_s11 = scalar_lea.vmem %s46_s10, 512  ;;  %p442_p11 = scmp.lt.s32.totalorder %s46_s10, %s46_s10 }
  0x19   :  { %p438_p10 = scmp.ne.s32.totalorder %s46_s10, %s437_s11  ;;  %p443_p12 = scmp.lt.s32.totalorder %s437_s11, %s437_s11 }
  0x1b   :  { %p444_p13 = por %p443_p12, %p442_p11 }
  0x1d   :  { %p445_p0 = pnand %p444_p13, %p438_p10 }
  0x1f   :  { %448 = shalt.err (!%p445_p0)
}
  0x20   :  { %51 = dma.hbm_to_vmem [thread:$0]  %s541_s3, 512, %s46_s10, [#allocation5], %s455_s26, %s455_s26, %s456_s27  }
  0x21   :  { %449 = dma.done.wait [#allocation3], 512  }
  0x22   :  { %450 = vsyncadd [#allocation3], 4294966784 }
  0x23   :  { %451 = dma.done.wait [#allocation5], 1024  }
  0x24   :  { %452 = vsyncadd [#allocation5], 4294966272  ;;  %v66_v0 = vld [vmem:[#allocation2 + $0x18] sm:$0xff]  ;;  %v65_v1 = vld [vmem:[#allocation2 + $0x10] sm:$0xff]  ;;  %vm67_vm0 = vcmask 261120  }
  0x25   :  { %351 = vmatprep.subr.mxu0 %v66_v0  ;;  %v154_v2 = vld [vmem:[#allocation4 + $0x18] sm:$0xff]  ;;  %v61_v3 = vld [vmem:[%s538_s0] sm:$0xff]  ;;  %v64_v4 = vld [vmem:[#allocation2 + $0x8] sm:$0xff] }
  0x26   :  { %352 = vmatpush3.msra.mxu0 %v66_v0  ;;  %362 = vmatprep.subr.mxu1 %v154_v2  ;;  %v153_v5 = vld [vmem:[#allocation4 + $0x10] sm:$0xff]  ;;  %v63_v6 = vld [vmem:[#allocation2] sm:$0xff]  ;;  %v152_v7 = vld [vmem:[#allocation4 + $0x8] sm:$0xff] }
  0x27   :  { %353 = vmatprep.subr.mxu0 %v65_v1  ;;  %359 = vmatprep.mubr.msk.f32.mxu0 %vm67_vm0, %v61_v3  ;;  %v62_v8 = vld [vmem:[%s538_s0 + $0x8] sm:$0xff]  ;;  %v235_v9 = vld [vmem:[#allocation6 + $0x18] sm:$0xff]  ;;  %v151_v10 = vld [vmem:[#allocation4] sm:$0xff] }
  0x28   :  { %354 = vmatpush3.msra.mxu0 %v65_v1  ;;  %363 = vmatpush3.msra.mxu1 %v154_v2  ;;  %v234_v11 = vld [vmem:[#allocation6 + $0x10] sm:$0xff]  ;;  %v233_v12 = vld [vmem:[#allocation6 + $0x8] sm:$0xff]  ;;  %v232_v13 = vld [vmem:[#allocation6] sm:$0xff] }
  0x29   :  { %355 = vmatprep.subr.mxu0 %v64_v4  ;;  %364 = vmatprep.subr.mxu1 %v153_v5 }
  0x2a   :  { %356 = vmatpush3.msra.mxu0 %v64_v4  ;;  %365 = vmatpush3.msra.mxu1 %v153_v5 }
  0x2b   :  { %357 = vmatprep.subr.mxu0 %v63_v6  ;;  %366 = vmatprep.subr.mxu1 %v152_v7 }
  0x2c   :  { %358 = vmatpush3.msra.mxu0 %v63_v6  ;;  %367 = vmatpush3.msra.mxu1 %v152_v7 }
  0x2d   :  { %360 = vmatmul.mubr.msk.f32.vlgmr.msra.gmra.mxu0 %vm67_vm0, %v62_v8  ;;  %373 = vmatprep.subr.mxu0 %v235_v9 }
  0x2e   :  { %374 = vmatpush3.msra.mxu0 %v235_v9  ;;  %368 = vmatprep.subr.mxu1 %v151_v10 }
  0x2f   :  { %375 = vmatprep.subr.mxu0 %v234_v11  ;;  %369 = vmatpush3.msra.mxu1 %v151_v10 }
  0x30   :  { %376 = vmatpush3.msra.mxu0 %v234_v11  ;;  %370 = vmatprep.mubr.msk.f32.mxu1 %vm67_vm0, %v61_v3 }
  0x31   :  { %377 = vmatprep.subr.mxu0 %v233_v12  ;;  %371 = vmatmul.mubr.msk.f32.vlgmr.msra.gmra.mxu1 %vm67_vm0, %v62_v8 }
  0x32   :  { %378 = vmatpush3.msra.mxu0 %v233_v12  ;;  %381 = vmatprep.mubr.msk.f32.mxu0 %vm67_vm0, %v61_v3 }
  0x33   :  { %379 = vmatprep.subr.mxu0 %v232_v13 }
  0x34   :  { %380 = vmatpush3.msra.mxu0 %v232_v13 }
  0x35   :  { %382 = vmatmul.mubr.msk.f32.vlgmr.msra.gmra.mxu0 %vm67_vm0, %v62_v8 }
  0xed   :  { %v361_v14 = vpop.f32.mrf.mxu0 }
  0xee   :  { %150 = vst.msk [vmem:[%s542_s4 + $0x8] sm:$0xff] %vm67_vm0, %v361_v14 }
  0xef   :  { %v140_v15 = vpop.f32.mrf.mxu0 }
  0xf0   :  { %149 = vst.msk [vmem:[%s542_s4] sm:$0xff] %vm67_vm0, %v140_v15 }
  0xf1   :  { %v372_v16 = vpop.f32.mrf.mxu1 }
  0xf2   :  { %231 = vst.msk [vmem:[%s543_s5 + $0x8] sm:$0xff] %vm67_vm0, %v372_v16 }
  0xf3   :  { %v221_v17 = vpop.f32.mrf.mxu1 }
  0xf4   :  { %230 = vst.msk [vmem:[%s543_s5] sm:$0xff] %vm67_vm0, %v221_v17 }
  0xf5   :  { %v383_v18 = vpop.f32.mrf.mxu0 }
  0xf6   :  { %312 = vst.msk [vmem:[%s544_s6 + $0x8] sm:$0xff] %vm67_vm0, %v383_v18 }
  0xf7   :  { %v302_v19 = vpop.f32.mrf.mxu0 }
  0xf8   :  { %311 = vst.msk [vmem:[%s544_s6] sm:$0xff] %vm67_vm0, %v302_v19 }
  0xf9   :  { %325 = vsyncpa [#allocation3], 1 }
  0xfa   :  { %326 = vsyncpa [#allocation5], 1 }

// kernel: _lambda_.7
= control target key start
LH: loop header
LB: loop body
LE: loop exit
PB: predicated region body
PF: predicated region fallthrough
CT: control target
= control target key end

     0   :  { %s1157_s15 = smov 0   ;;  %s1241_s0 = inlined_call_operand.vmem [shape: f32[2,4,8,8], index: 0, kind: input, shape index: {}]   ;;  %s1242_s1 = inlined_call_operand.vmem [shape: f32[2,4,8,8], index: 1, kind: input, shape index: {}]   ;;  %s1243_s2 = inlined_call_operand.vmem [shape: f32[2,4,8,8], index: 2, kind: input, shape index: {}]   ;;  %s1244_s3 = inlined_call_operand.vmem [shape: f32[2,1,8], index: 3, kind: input, shape index: {}]   ;;  %s1245_s4 = inlined_call_operand.vmem [shape: f32[2,4,8,8], index: 4, kind: output, shape index: {}]  }
   0x1 LB: > { %s1008_s16 = sadd.s32 4294967295, %s1128_s15   ;;  %p1012_p0 = scmp.ge.s32.totalorder %s1128_s15, 1  ;;  %s1128_s15 = sphi %s1157_s15, %s14_s15  }
   0x2   : > { %p190_p1 = scmp.lt.s32.totalorder %s1128_s15, 3 }
   0x4   : > { %p191_p2 = pnand %p1012_p0, %p190_p1 }
   0x5   : > { %p229_p3 = scmp.lt.s32.totalorder (!%p191_p2), %s1008_s16, 1 }
   0x6   : > { %194 = sbr.rel (%p191_p2) target bundleno = 728 (0x2d8), region = 36 }
   0xb   : > { %v1130_v0 = vmov 0.0   ;;  %vm1131_vm0 = vmmov 0   ;;  %s1247_s16 = smov (!%p229_p3, %s1008_s16), 1  ;;  %vm275_vm1 = vcmask 64512  }
   0xc   : > { %1056 = vmatprep.subr.mxu0 %v1130_v0  ;;  %1058 = vmatprep.mubr.msk.f32.mxu0 %vm1131_vm0, %v1130_v0  ;;  %s1174_s17 = sshll.u32 %s1247_s16, 5  ;;  %s246_s26 = scalar_lea.vmem %s1244_s3, %s1247_s16 }
   0xd   : > { %1061 = vmatprep.subr.mxu1 %v1130_v0  ;;  %1063 = vmatprep.mubr.msk.f32.mxu1 %vm1131_vm0, %v1130_v0  ;;  %s238_s20 = scalar_lea.vmem %s1242_s1, %s1174_s17  ;;  %s233_s23 = scalar_lea.vmem %s1241_s0, %s1174_s17  ;;  %v1021_v13 = vld [vmem:[%s246_s26] ss:$0 sm:$0xff] }
   0xe   : > { %v260_v1 = vld [vmem:[%s238_s20] sm:$0xff]  ;;  %v261_v3 = vld [vmem:[%s238_s20 + $0x8] sm:$0xff]  ;;  %v254_v6 = vld [vmem:[%s233_s23 + $0x10] sm:$0xff]  ;;  %s243_s29 = scalar_lea.vmem %s1243_s2, %s1174_s17  ;;  %s251_s6 = scalar_lea.vmem %s1245_s4, %s1174_s17 }
   0xf   : > { %v252_v2 = vld [vmem:[%s233_s23] sm:$0xff]  ;;  %1057 = vmatpush3.xpose.msk.msra.mxu0 %vm275_vm1, %v260_v1  ;;  %1062 = vmatpush3.xpose.msk.msra.mxu1 %vm275_vm1, %v261_v3  ;;  %v253_v5 = vld [vmem:[%s233_s23 + $0x8] sm:$0xff]  ;;  %v262_v7 = vld [vmem:[%s238_s20 + $0x10] sm:$0xff]  ;;  %v258_v11 = vmul.f32 0.35355338, %v254_v6 }
  0x10   : > { %v256_v4 = vmul.f32 0.35355338, %v252_v2  ;;  %1066 = vmatprep.subr.mxu0 %v1130_v0  ;;  %v257_v8 = vmul.f32 0.35355338, %v253_v5  ;;  %1071 = vmatprep.subr.mxu1 %v1130_v0  ;;  %v255_v9 = vld [vmem:[%s233_s23 + $0x18] sm:$0xff]  ;;  %v264_v50 = vld [vmem:[%s243_s29] sm:$0xff] }
  0x11   : > { %v263_v10 = vld [vmem:[%s238_s20 + $0x18] sm:$0xff]  ;;  %v259_v12 = vmul.f32 0.35355338, %v255_v9  ;;  %v265_v51 = vld [vmem:[%s243_s29 + $0x8] sm:$0xff]  ;;  %v266_v58 = vld [vmem:[%s243_s29 + $0x10] sm:$0xff] }
  0x12   : > { %1059 = vmatmul.mubr.msk.f32.vlgmr.msra.gmra.mxu0 %vm275_vm1, %v256_v4  ;;  %1064 = vmatmul.mubr.msk.f32.vlgmr.msra.gmra.mxu1 %vm275_vm1, %v257_v8  ;;  %v267_v62 = vld [vmem:[%s243_s29 + $0x18] sm:$0xff] }
  0x13   : > { %1067 = vmatpush3.xpose.msk.msra.mxu0 %vm275_vm1, %v262_v7  ;;  %1068 = vmatprep.mubr.msk.f32.mxu0 %vm1131_vm0, %v1130_v0 }
  0x14   : > { %1072 = vmatpush3.xpose.msk.msra.mxu1 %vm275_vm1, %v263_v10  ;;  %1073 = vmatprep.mubr.msk.f32.mxu1 %vm1131_vm0, %v1130_v0 }
  0x15   : > { %1076 = vmatprep.subr.mxu0 %v1130_v0  ;;  %1081 = vmatprep.subr.mxu1 %v1130_v0 }
  0x16   : > { %1069 = vmatmul.mubr.msk.f32.vlgmr.msra.gmra.mxu0 %vm275_vm1, %v258_v11 }
  0x17   : > { %1074 = vmatmul.mubr.msk.f32.vlgmr.msra.gmra.mxu1 %vm275_vm1, %v259_v12  ;;  %1078 = vmatprep.mubr.msk.f32.mxu0 %vm1131_vm0, %v1130_v0 }
  0x18   : > { %1083 = vmatprep.mubr.msk.f32.mxu1 %vm1131_vm0, %v1130_v0  ;;  %1077 = vmatpush3.msra.mxu0 %v264_v50 }
  0x19   : > { %1086 = vmatprep.subr.mxu0 %v1130_v0  ;;  %1082 = vmatpush3.msra.mxu1 %v265_v51 }
  0x1a   : > { %1091 = vmatprep.subr.mxu1 %v1130_v0 }
  0xd2   : > { %v348_v14 = vpop.f32.mrf.mxu0  ;;  %v424_v15 = vpop.f32.mrf.mxu1 }
  0xd3   : > { %v349_v16 = vadd.f32 %v1021_v13, %v348_v14  ;;  %v425_v17 = vadd.f32 %v1021_v13, %v424_v15 }
  0xd4   : > { %v1060_v18 = vpop.f32.mrf.mxu0  ;;  %v1065_v19 = vpop.f32.mrf.mxu1 }
  0xd5   : > { %v580_v20 = vsel %vm275_vm1, %v349_v16, -inf  ;;  %v583_v24 = vsel %vm275_vm1, %v425_v17, -inf }
  0xd6   : > { %581 = vmax.xlane.f32.xlu0 %v580_v20  ;;  %v500_v21 = vpop.f32.mrf.mxu0 }
  0xd7   : > { %v501_v22 = vadd.f32 %v1021_v13, %v500_v21  ;;  %v576_v23 = vpop.f32.mrf.mxu1 }
  0xd8   : > { %v1070_v25 = vpop.f32.mrf.mxu0  ;;  %v577_v26 = vadd.f32 %v1021_v13, %v576_v23 }
  0xd9   : > { %v586_v27 = vsel %vm275_vm1, %v501_v22, -inf  ;;  %v1075_v28 = vpop.f32.mrf.mxu1 }
  0xda   : > { %584 = vmax.xlane.f32.xlu0 %v583_v24  ;;  %587 = vmax.xlane.f32.xlu1 %v586_v27  ;;  %v589_v29 = vsel %vm275_vm1, %v577_v26, -inf }
  0xde   : > { %590 = vmax.xlane.f32.xlu1 %v589_v29 }
 0x15f   : > { %v582_v30 = vpop.xlane.xlu0 %581 }
 0x160   : > { %v592_v31 = vsub.f32 %v349_v16, %v582_v30 }
 0x162   : > { %v596_v32 = vmul.f32 1.442695, %v592_v31 }
 0x163   : > { %v585_v33 = vpop.xlane.xlu0 %584  ;;  %v588_v34 = vpop.xlane.xlu1 %587 }
 0x164   : > { %1106 = vpow2.f32 %v596_v32  ;;  %v593_v35 = vsub.f32 %v425_v17, %v585_v33  ;;  %v594_v36 = vsub.f32 %v501_v22, %v588_v34 }
 0x166   : > { %v598_v37 = vmul.f32 1.442695, %v593_v35  ;;  %v600_v38 = vmul.f32 1.442695, %v594_v36 }
 0x167   : > { %v591_v39 = vpop.xlane.xlu1 %590 }
 0x168   : > { %1108 = vpow2.f32 %v598_v37  ;;  %v595_v40 = vsub.f32 %v577_v26, %v591_v39 }
 0x169   : > { %1110 = vpow2.f32 %v600_v38 }
 0x16a   : > { %v602_v41 = vmul.f32 1.442695, %v595_v40 }
 0x16c   : > { %1112 = vpow2.f32 %v602_v41 }
 0x171   : > { %v1107_v42 = vpop.eup %1106 }
 0x172   : > { %v604_v43 = vsel %vm275_vm1, %v1107_v42, 0.0 }
 0x173   : > { %605 = vadd.xlane.f32.xlu0 %v604_v43 }
 0x175   : > { %v1109_v44 = vpop.eup %1108 }
 0x176   : > { %v1111_v45 = vpop.eup %1110  ;;  %v607_v46 = vsel %vm275_vm1, %v1109_v44, 0.0 }
 0x177   : > { %608 = vadd.xlane.f32.xlu1 %v607_v46  ;;  %v610_v47 = vsel %vm275_vm1, %v1111_v45, 0.0 }
 0x178   : > { %611 = vadd.xlane.f32.xlu0 %v610_v47 }
 0x179   : > { %v1113_v48 = vpop.eup %1112 }
 0x17a   : > { %v613_v49 = vsel %vm275_vm1, %v1113_v48, 0.0 }
 0x17b   : > { %614 = vadd.xlane.f32.xlu1 %v613_v49 }
 0x1fc   : > { %v606_v52 = vpop.xlane.xlu0 %605 }
 0x1fd   : > { %1114 = vrcp.f32 %v606_v52 }
 0x200   : > { %v609_v53 = vpop.xlane.xlu1 %608 }
 0x201   : > { %v612_v54 = vpop.xlane.xlu0 %611  ;;  %1116 = vrcp.f32 %v609_v53 }
 0x202   : > { %1118 = vrcp.f32 %v612_v54 }
 0x204   : > { %v615_v55 = vpop.xlane.xlu1 %614 }
 0x205   : > { %1120 = vrcp.f32 %v615_v55 }
 0x20a   : > { %v1115_v56 = vpop.eup %1114 }
 0x20b   : > { %v620_v57 = vmul.f32 %v1115_v56, %v1107_v42 }
 0x20d   : > { %1079 = vmatmul.mubr.msk.f32.vlgmr.msra.gmra.mxu0 %vm275_vm1, %v620_v57 }
 0x20e   : > { %v1117_v59 = vpop.eup %1116  ;;  %1087 = vmatpush3.msra.mxu0 %v266_v58  ;;  %1088 = vmatprep.mubr.msk.f32.mxu0 %vm1131_vm0, %v1130_v0 }
 0x20f   : > { %v1119_v60 = vpop.eup %1118  ;;  %v621_v61 = vmul.f32 %v1117_v59, %v1109_v44 }
 0x210   : > { %v622_v63 = vmul.f32 %v1119_v60, %v1111_v45 }
 0x211   : > { %1084 = vmatmul.mubr.msk.f32.vlgmr.msra.gmra.mxu1 %vm275_vm1, %v621_v61 }
 0x212   : > { %v1121_v1 = vpop.eup %1120  ;;  %1089 = vmatmul.mubr.msk.f32.vlgmr.msra.gmra.mxu0 %vm275_vm1, %v622_v63  ;;  %1092 = vmatpush3.msra.mxu1 %v267_v62 }
 0x213   : > { %1093 = vmatprep.mubr.msk.f32.mxu1 %vm1131_vm0, %v1130_v0  ;;  %v623_v2 = vmul.f32 %v1121_v1, %v1113_v48 }
 0x215   : > { %1094 = vmatmul.mubr.msk.f32.vlgmr.msra.gmra.mxu1 %vm275_vm1, %v623_v2 }
 0x2cd   : > { %v693_v3 = vpop.f32.mrf.mxu0 }
 0x2ce   : > { %916 = vst.msk [vmem:[%s251_s6] sm:$0xff] %vm275_vm1, %v693_v3 }
 0x2cf   : > { %v1080_v4 = vpop.f32.mrf.mxu0 }
 0x2d1   : > { %v766_v5 = vpop.f32.mrf.mxu1 }
 0x2d2   : > { %917 = vst.msk [vmem:[%s251_s6 + $0x8] sm:$0xff] %vm275_vm1, %v766_v5  ;;  %v839_v6 = vpop.f32.mrf.mxu0 }
 0x2d3   : > { %918 = vst.msk [vmem:[%s251_s6 + $0x10] sm:$0xff] %vm275_vm1, %v839_v6  ;;  %v1085_v7 = vpop.f32.mrf.mxu1 }
 0x2d4   : > { %v1090_v8 = vpop.f32.mrf.mxu0 }
 0x2d5   : > { %v912_v0 = vpop.f32.mrf.mxu1 }
 0x2d6   : > { %919 = vst.msk [vmem:[%s251_s6 + $0x18] sm:$0xff] %vm275_vm1, %v912_v0 }
 0x2d7   : > { %v1095_v9 = vpop.f32.mrf.mxu1 }
 0x2d8 PF: > { %s14_s15 = sadd.s32 1, %s1128_s15  }
 0x2d9   : > { %p11_p4 = scmp.ge.s32.totalorder %s14_s15, 4  }
 0x2db   :  { %13 = sbr.rel (!%p11_p4) target bundleno = 1 (0x1), region = 75 }

// kernel: _lambda_.8
= control target key start
LH: loop header
LB: loop body
LE: loop exit
PB: predicated region body
PF: predicated region fallthrough
CT: control target
= control target key end

     0   :  { %vm44_vm0 = vcmask 261120   ;;  %vm284_vm1 = vcmask 523264   ;;  %s659_s2 = inlined_call_operand.vmem [shape: f32[32,32], index: 2, kind: input, shape index: {}]   ;;  %s660_s1 = inlined_call_operand.vmem [shape: f32[16,32], index: 1, kind: input, shape index: {}]   ;;  %s661_s0 = inlined_call_operand.vmem [shape: f32[16,32], index: 0, kind: input, shape index: {}]   ;;  %s662_s5 = inlined_call_operand.vmem [shape: f32[32,64], index: 5, kind: input, shape index: {}]   ;;  %s663_s7 = inlined_call_operand.vmem [shape: f32[64,32], index: 7, kind: input, shape index: {}]   ;;  %s664_s3 = inlined_call_operand.vmem [shape: f32[1,32], index: 3, kind: input, shape index: {}]   ;;  %s665_s4 = inlined_call_operand.vmem [shape: f32[1,32], index: 4, kind: input, shape index: {}]   ;;  %s666_s6 = inlined_call_operand.vmem [shape: f32[1,64], index: 6, kind: input, shape index: {}]   ;;  %s667_s8 = inlined_call_operand.vmem [shape: f32[1,32], index: 8, kind: input, shape index: {}]   ;;  %s668_s9 = inlined_call_operand.vmem [shape: f32[1,32], index: 9, kind: input, shape index: {}]   ;;  %s669_s10 = inlined_call_operand.vmem [shape: f32[1,32], index: 10, kind: input, shape index: {}]   ;;  %s670_s11 = inlined_call_operand.vmem [shape: f32[16,32], index: 11, kind: output, shape index: {}]  }
   0x1   :  { %v43_v0 = vld [vmem:[%s659_s2 + $0x18] sm:$0xff]  ;;  %v42_v1 = vld [vmem:[%s659_s2 + $0x10] sm:$0xff]  ;;  %v38_v2 = vld [vmem:[%s660_s1] sm:$0xff] }
   0x2   :  { %452 = vmatprep.subr.mxu1 %v43_v0  ;;  %v41_v3 = vld [vmem:[%s659_s2 + $0x8] sm:$0xff]  ;;  %460 = vmatprep.mubr.msk.f32.mxu1 %vm44_vm0, %v38_v2  ;;  %v40_v4 = vld [vmem:[%s659_s2] sm:$0xff]  ;;  %v178_v24 = vld [vmem:[%s662_s5 + $0x18] sm:$0xff] }
   0x3   :  { %453 = vmatpush3.msra.mxu1 %v43_v0  ;;  %v39_v5 = vld [vmem:[%s660_s1 + $0x8] sm:$0xff]  ;;  %v126_v7 = vld [vmem:[%s661_s0] sm:$0xff]  ;;  %v177_v25 = vld [vmem:[%s662_s5 + $0x10] sm:$0xff] }
   0x4   :  { %454 = vmatprep.subr.mxu1 %v42_v1  ;;  %v127_v8 = vld [vmem:[%s661_s0 + $0x8] sm:$0xff]  ;;  %v175_v27 = vld [vmem:[%s662_s5] sm:$0xff]  ;;  %v276_v28 = vld [vmem:[%s663_s7 + $0x38] sm:$0xff] }
   0x5   :  { %455 = vmatpush3.msra.mxu1 %v42_v1  ;;  %v176_v26 = vld [vmem:[%s662_s5 + $0x8] sm:$0xff]  ;;  %v275_v29 = vld [vmem:[%s663_s7 + $0x30] sm:$0xff]  ;;  %474 = vmatprep.subr.mxu0 %v276_v28  ;;  %v273_v31 = vld [vmem:[%s663_s7 + $0x20] sm:$0xff] }
   0x6   :  { %456 = vmatprep.subr.mxu1 %v41_v3  ;;  %475 = vmatpush3.msra.mxu0 %v276_v28  ;;  %v274_v30 = vld [vmem:[%s663_s7 + $0x28] sm:$0xff]  ;;  %v420_v39 = vld [vmem:[%s664_s3] ss:$0 sm:$0xff]  ;;  %v272_v48 = vld [vmem:[%s663_s7 + $0x18] sm:$0xff] }
   0x7   :  { %457 = vmatpush3.msra.mxu1 %v41_v3  ;;  %476 = vmatprep.subr.mxu0 %v275_v29  ;;  %v421_v41 = vld [vmem:[%s665_s4] ss:$0 sm:$0xff]  ;;  %v271_v49 = vld [vmem:[%s663_s7 + $0x10] sm:$0xff]  ;;  %v270_v50 = vld [vmem:[%s663_s7 + $0x8] sm:$0xff] }
   0x8   :  { %458 = vmatprep.subr.mxu1 %v40_v4  ;;  %477 = vmatpush3.msra.mxu0 %v275_v29  ;;  %v269_v51 = vld [vmem:[%s663_s7] sm:$0xff] }
   0x9   :  { %459 = vmatpush3.msra.mxu1 %v40_v4  ;;  %478 = vmatprep.subr.mxu0 %v274_v30  ;;  %v422_v52 = vld [vmem:[%s666_s6] ss:$0 sm:$0xff] }
   0xa   :  { %461 = vmatmul.mubr.msk.f32.vlgmr.msra.gmra.mxu1 %vm44_vm0, %v39_v5  ;;  %463 = vmatprep.subr.mxu1 %v178_v24  ;;  %v425_v59 = vld [vmem:[%s667_s8] ss:$0 sm:$0xff] }
   0xb   :  { %464 = vmatpush3.msra.mxu1 %v178_v24  ;;  %479 = vmatpush3.msra.mxu0 %v274_v30  ;;  %v429_v24 = vld [vmem:[%s669_s10] ss:$0 sm:$0xff] }
   0xc   :  { %465 = vmatprep.subr.mxu1 %v177_v25  ;;  %480 = vmatprep.subr.mxu0 %v273_v31 }
   0xd   :  { %466 = vmatpush3.msra.mxu1 %v177_v25  ;;  %481 = vmatpush3.msra.mxu0 %v273_v31 }
   0xe   :  { %467 = vmatprep.subr.mxu1 %v176_v26  ;;  %482 = vmatprep.subr.mxu0 %v272_v48 }
   0xf   :  { %468 = vmatpush3.msra.mxu1 %v176_v26  ;;  %483 = vmatpush3.msra.mxu0 %v272_v48 }
  0x10   :  { %469 = vmatprep.subr.mxu1 %v175_v27  ;;  %484 = vmatprep.subr.mxu0 %v271_v49 }
  0x11   :  { %470 = vmatpush3.msra.mxu1 %v175_v27  ;;  %485 = vmatpush3.msra.mxu0 %v271_v49 }
  0x12   :  { %486 = vmatprep.subr.mxu0 %v270_v50 }
  0x13   :  { %487 = vmatpush3.msra.mxu0 %v270_v50 }
  0x14   :  { %488 = vmatprep.subr.mxu0 %v269_v51 }
  0x15   :  { %489 = vmatpush3.msra.mxu0 %v269_v51 }
  0xca   :  { %v462_v6 = vpop.f32.mrf.mxu1 }
  0xcb   :  { %v129_v11 = vadd.f32 %v462_v6, %v127_v8 }
  0xcc   :  { %v117_v9 = vpop.f32.mrf.mxu1 }
  0xcd   :  { %v128_v10 = vadd.f32 %v126_v7, %v117_v9  ;;  %v135_v13 = vsel %vm44_vm0, %v129_v11, 0.0 }
  0xcf   :  { %v132_v12 = vsel %vm44_vm0, %v128_v10, 0.0 }
  0xd0   :  { %133 = vadd.xlane.f32.xlu0 %v132_v12 }
  0xd4   :  { %136 = vadd.xlane.f32.xlu0 %v135_v13 }
 0x159   :  { %v134_v14 = vpop.xlane.xlu0 %133 }
 0x15a   :  { %v139_v15 = vmul.f32 0.03125, %v134_v14 }
 0x15c   :  { %v141_v16 = vsub.f32 %v128_v10, %v139_v15 }
 0x15d   :  { %v137_v17 = vpop.xlane.xlu0 %136 }
 0x15e   :  { %v140_v18 = vmul.f32 0.03125, %v137_v17  ;;  %v143_v19 = vmul.f32 %v141_v16, %v141_v16 }
 0x160   :  { %v142_v20 = vsub.f32 %v129_v11, %v140_v18  ;;  %v145_v21 = vsel %vm44_vm0, %v143_v19, 0.0 }
 0x161   :  { %146 = vadd.xlane.f32.xlu1 %v145_v21  ;;  %v428_v21 = vld [vmem:[%s668_s9] ss:$0 sm:$0xff] }
 0x162   :  { %v144_v22 = vmul.f32 %v142_v20, %v142_v20 }
 0x164   :  { %v148_v23 = vsel %vm44_vm0, %v144_v22, 0.0 }
 0x165   :  { %149 = vadd.xlane.f32.xlu1 %v148_v23 }
 0x1ea   :  { %v147_v32 = vpop.xlane.xlu1 %146 }
 0x1eb   :  { %v151_v33 = vmul.f32 0.03125, %v147_v32 }
 0x1ed   :  { %v153_v34 = vadd.f32 1e-05, %v151_v33 }
 0x1ee   :  { %v150_v35 = vpop.xlane.xlu1 %149 }
 0x1ef   :  { %493 = vrsqrt.f32 %v153_v34  ;;  %v152_v36 = vmul.f32 0.03125, %v150_v35 }
 0x1f1   :  { %v154_v37 = vadd.f32 1e-05, %v152_v36 }
 0x1f3   :  { %495 = vrsqrt.f32 %v154_v37 }
 0x1fc   :  { %v494_v38 = vpop.eup %493 }
 0x1fd   :  { %v157_v40 = vmul.f32 %v494_v38, %v141_v16 }
 0x1ff   :  { %v165_v42 = vmul.f32 %v420_v39, %v157_v40 }
 0x200   :  { %v496_v43 = vpop.eup %495 }
 0x201   :  { %v158_v44 = vmul.f32 %v496_v43, %v142_v20  ;;  %v173_v45 = vadd.f32 %v421_v41, %v165_v42 }
 0x203   :  { %v166_v46 = vmul.f32 %v420_v39, %v158_v44  ;;  %471 = vmatprep.mubr.msk.f32.mxu1 %vm44_vm0, %v173_v45 }
 0x205   :  { %v174_v47 = vadd.f32 %v421_v41, %v166_v46 }
 0x207   :  { %472 = vmatmul.mubr.msk.f32.vlgmr.msra.gmra.mxu1 %vm44_vm0, %v174_v47 }
 0x2c7   :  { %v473_v53 = vpop.f32.mrf.mxu1 }
 0x2c8   :  { %v264_v54 = vadd.f32 %v473_v53, %v422_v52 }
 0x2c9   :  { %v258_v55 = vpop.f32.mrf.mxu1 }
 0x2ca   :  { %v259_v56 = vadd.f32 %v422_v52, %v258_v55  ;;  %v268_v58 = vmax.f32 %v264_v54, 0.0 }
 0x2cc   :  { %v267_v57 = vmax.f32 %v259_v56, 0.0 }
 0x2ce   :  { %490 = vmatprep.mubr.msk.f32.mxu0 %vm284_vm1, %v267_v57 }
 0x2cf   :  { %491 = vmatmul.mubr.msk.f32.vlgmr.msra.gmra.mxu0 %vm284_vm1, %v268_v58 }
 0x38f   :  { %v492_v60 = vpop.f32.mrf.mxu0 }
 0x390   :  { %v363_v61 = vadd.f32 %v492_v60, %v425_v59 }
 0x391   :  { %v357_v62 = vpop.f32.mrf.mxu0 }
 0x392   :  { %v358_v63 = vadd.f32 %v425_v59, %v357_v62  ;;  %v367_v0 = vadd.f32 %v363_v61, %v174_v47 }
 0x394   :  { %v373_v1 = vsel %vm44_vm0, %v367_v0, 0.0  ;;  %v366_v2 = vadd.f32 %v358_v63, %v173_v45 }
 0x395   :  { %374 = vadd.xlane.f32.xlu1 %v373_v1 }
 0x396   :  { %v370_v3 = vsel %vm44_vm0, %v366_v2, 0.0 }
 0x397   :  { %371 = vadd.xlane.f32.xlu0 %v370_v3 }
 0x41e   :  { %v375_v4 = vpop.xlane.xlu1 %374 }
 0x41f   :  { %v377_v5 = vmul.f32 0.03125, %v375_v4 }
 0x420   :  { %v372_v6 = vpop.xlane.xlu0 %371 }
 0x421   :  { %v379_v7 = vsub.f32 %v367_v0, %v377_v5  ;;  %v376_v8 = vmul.f32 0.03125, %v372_v6 }
 0x423   :  { %v378_v9 = vsub.f32 %v366_v2, %v376_v8  ;;  %v381_v10 = vmul.f32 %v379_v7, %v379_v7 }
 0x425   :  { %v385_v11 = vsel %vm44_vm0, %v381_v10, 0.0  ;;  %v380_v12 = vmul.f32 %v378_v9, %v378_v9 }
 0x426   :  { %386 = vadd.xlane.f32.xlu1 %v385_v11 }
 0x427   :  { %v382_v13 = vsel %vm44_vm0, %v380_v12, 0.0 }
 0x428   :  { %383 = vadd.xlane.f32.xlu0 %v382_v13 }
 0x4af   :  { %v387_v14 = vpop.xlane.xlu1 %386 }
 0x4b0   :  { %v389_v15 = vmul.f32 0.03125, %v387_v14 }
 0x4b1   :  { %v384_v16 = vpop.xlane.xlu0 %383 }
 0x4b2   :  { %v391_v17 = vadd.f32 1e-05, %v389_v15  ;;  %v388_v18 = vmul.f32 0.03125, %v384_v16 }
 0x4b4   :  { %497 = vrsqrt.f32 %v391_v17  ;;  %v390_v19 = vadd.f32 1e-05, %v388_v18 }
 0x4b6   :  { %499 = vrsqrt.f32 %v390_v19 }
 0x4c1   :  { %v498_v20 = vpop.eup %497 }
 0x4c2   :  { %v395_v22 = vmul.f32 %v498_v20, %v379_v7 }
 0x4c3   :  { %v500_v23 = vpop.eup %499 }
 0x4c4   :  { %v403_v25 = vmul.f32 %v428_v21, %v395_v22  ;;  %v394_v26 = vmul.f32 %v500_v23, %v378_v9 }
 0x4c6   :  { %v411_v27 = vadd.f32 %v429_v24, %v403_v25  ;;  %v402_v28 = vmul.f32 %v428_v21, %v394_v26 }
 0x4c8   :  { %413 = vst.msk [vmem:[%s670_s11 + $0x8] sm:$0xff] %vm44_vm0, %v411_v27  ;;  %v410_v29 = vadd.f32 %v429_v24, %v402_v28 }
 0x4ca   :  { %412 = vst.msk [vmem:[%s670_s11] sm:$0xff] %vm44_vm0, %v410_v29 }

// kernel: _lambda_.11
= control target key start
LH: loop header
LB: loop body
LE: loop exit
PB: predicated region body
PF: predicated region fallthrough
CT: control target
= control target key end

     0   :  { %vm45_vm0 = vcmask 261120   ;;  %s697_s0 = inlined_call_operand.vmem [shape: f32[16,32], index: 0, kind: input, shape index: {}]   ;;  %s698_s1 = inlined_call_operand.vmem [shape: f32[16,32], index: 1, kind: input, shape index: {}]   ;;  %s699_s2 = inlined_call_operand.vmem [shape: f32[32,32], index: 2, kind: input, shape index: {}]   ;;  %s700_s3 = inlined_call_operand.vmem [shape: f32[1,32], index: 3, kind: input, shape index: {}]   ;;  %s701_s4 = inlined_call_operand.vmem [shape: f32[1,32], index: 4, kind: input, shape index: {}]   ;;  %s702_s5 = inlined_call_operand.vmem [shape: f32[32,64], index: 5, kind: input, shape index: {}]   ;;  %s703_s6 = inlined_call_operand.vmem [shape: f32[1,64], index: 6, kind: input, shape index: {}]   ;;  %s704_s7 = inlined_call_operand.vmem [shape: f32[64,32], index: 7, kind: input, shape index: {}]   ;;  %s705_s8 = inlined_call_operand.vmem [shape: f32[1,32], index: 8, kind: input, shape index: {}]   ;;  %s706_s9 = inlined_call_operand.vmem [shape: f32[1,32], index: 9, kind: input, shape index: {}]   ;;  %s707_s10 = inlined_call_operand.vmem [shape: f32[1,32], index: 10, kind: input, shape index: {}]   ;;  %s708_s11 = inlined_call_operand.hbm [shape: f32[16,32], index: 11, kind: output, shape index: {}]  }
   0x1   :  { %v44_v0 = vld [vmem:[%s699_s2 + $0x18] sm:$0xff]  ;;  %v43_v1 = vld [vmem:[%s699_s2 + $0x10] sm:$0xff]  ;;  %v39_v2 = vld [vmem:[%s698_s1] sm:$0xff] }
   0x2   :  { %465 = vmatprep.subr.mxu1 %v44_v0  ;;  %v42_v3 = vld [vmem:[%s699_s2 + $0x8] sm:$0xff]  ;;  %473 = vmatprep.mubr.msk.f32.mxu1 %vm45_vm0, %v39_v2 }
   0x3   :  { %466 = vmatpush3.msra.mxu1 %v44_v0 }
   0x4   :  { %16 = vsyncpa [#allocation3], 0  ;;  %467 = vmatprep.subr.mxu1 %v43_v1  ;;  %v41_v4 = vld [vmem:[%s699_s2] sm:$0xff]  ;;  %v40_v5 = vld [vmem:[%s698_s1 + $0x8] sm:$0xff]  ;;  %vm285_vm1 = vcmask 523264   ;;  %s539_s19 = smov [#allocation2]  }
   0x5   :  { %468 = vmatpush3.msra.mxu1 %v43_v1  ;;  %v127_v7 = vld [vmem:[%s697_s0] sm:$0xff]  ;;  %v128_v8 = vld [vmem:[%s697_s0 + $0x8] sm:$0xff]  ;;  %v179_v24 = vld [vmem:[%s702_s5 + $0x18] sm:$0xff]  ;;  %s420_s20 = sshll.u32 %s539_s19, 4  ;;  %s421_s20 = int_to_ptr.vmem [resolvable:$true] %s420_s20 }
   0x6   :  { %469 = vmatprep.subr.mxu1 %v42_v3  ;;  %v178_v25 = vld [vmem:[%s702_s5 + $0x10] sm:$0xff]  ;;  %v177_v26 = vld [vmem:[%s702_s5 + $0x8] sm:$0xff]  ;;  %v176_v27 = vld [vmem:[%s702_s5] sm:$0xff]  ;;  %s517_s21 = scalar_lea.vmem %s421_s20, 256  ;;  %p522_p1 = scmp.lt.s32.totalorder %s421_s20, %s421_s20 }
   0x7   :  { %470 = vmatpush3.msra.mxu1 %v42_v3  ;;  %v277_v28 = vld [vmem:[%s704_s7 + $0x38] sm:$0xff]  ;;  %v276_v29 = vld [vmem:[%s704_s7 + $0x30] sm:$0xff]  ;;  %v275_v30 = vld [vmem:[%s704_s7 + $0x28] sm:$0xff]  ;;  %p518_p0 = scmp.ne.s32.totalorder %s421_s20, %s517_s21  ;;  %p523_p2 = scmp.lt.s32.totalorder %s517_s21, %s517_s21 }
   0x8   :  { %471 = vmatprep.subr.mxu1 %v41_v4  ;;  %487 = vmatprep.subr.mxu0 %v277_v28  ;;  %v274_v31 = vld [vmem:[%s704_s7 + $0x20] sm:$0xff]  ;;  %v273_v48 = vld [vmem:[%s704_s7 + $0x18] sm:$0xff]  ;;  %v272_v49 = vld [vmem:[%s704_s7 + $0x10] sm:$0xff] }
   0x9   :  { %472 = vmatpush3.msra.mxu1 %v41_v4  ;;  %488 = vmatpush3.msra.mxu0 %v277_v28  ;;  %v433_v39 = vld [vmem:[%s700_s3] ss:$0 sm:$0xff]  ;;  %v271_v50 = vld [vmem:[%s704_s7 + $0x8] sm:$0xff]  ;;  %p524_p3 = por %p523_p2, %p522_p1 }
   0xa   :  { %474 = vmatmul.mubr.msk.f32.vlgmr.msra.gmra.mxu1 %vm45_vm0, %v40_v5  ;;  %476 = vmatprep.subr.mxu1 %v179_v24  ;;  %v434_v41 = vld [vmem:[%s701_s4] ss:$0 sm:$0xff] }
   0xb   :  { %477 = vmatpush3.msra.mxu1 %v179_v24  ;;  %489 = vmatprep.subr.mxu0 %v276_v29  ;;  %v270_v51 = vld [vmem:[%s704_s7] sm:$0xff]  ;;  %p525_p4 = pnand %p524_p3, %p518_p0 }
   0xc   :  { %478 = vmatprep.subr.mxu1 %v178_v25  ;;  %490 = vmatpush3.msra.mxu0 %v276_v29  ;;  %v435_v52 = vld [vmem:[%s703_s6] ss:$0 sm:$0xff] }
   0xd   :  { %479 = vmatpush3.msra.mxu1 %v178_v25  ;;  %491 = vmatprep.subr.mxu0 %v275_v30  ;;  %v438_v59 = vld [vmem:[%s705_s8] ss:$0 sm:$0xff] }
   0xe   :  { %480 = vmatprep.subr.mxu1 %v177_v26  ;;  %492 = vmatpush3.msra.mxu0 %v275_v30  ;;  %v442_v24 = vld [vmem:[%s707_s10] ss:$0 sm:$0xff] }
   0xf   :  { %481 = vmatpush3.msra.mxu1 %v177_v26  ;;  %493 = vmatprep.subr.mxu0 %v274_v31 }
  0x10   :  { %482 = vmatprep.subr.mxu1 %v176_v27  ;;  %494 = vmatpush3.msra.mxu0 %v274_v31 }
  0x11   :  { %483 = vmatpush3.msra.mxu1 %v176_v27  ;;  %495 = vmatprep.subr.mxu0 %v273_v48 }
  0x12   :  { %496 = vmatpush3.msra.mxu0 %v273_v48 }
  0x13   :  { %497 = vmatprep.subr.mxu0 %v272_v49 }
  0x14   :  { %498 = vmatpush3.msra.mxu0 %v272_v49 }
  0x15   :  { %499 = vmatprep.subr.mxu0 %v271_v50 }
  0x16   :  { %500 = vmatpush3.msra.mxu0 %v271_v50 }
  0x17   :  { %501 = vmatprep.subr.mxu0 %v270_v51 }
  0x18   :  { %502 = vmatpush3.msra.mxu0 %v270_v51 }
  0xca   :  { %v475_v6 = vpop.f32.mrf.mxu1 }
  0xcb   :  { %v130_v11 = vadd.f32 %v475_v6, %v128_v8 }
  0xcc   :  { %v118_v9 = vpop.f32.mrf.mxu1 }
  0xcd   :  { %v129_v10 = vadd.f32 %v127_v7, %v118_v9  ;;  %v136_v13 = vsel %vm45_vm0, %v130_v11, 0.0 }
  0xcf   :  { %v133_v12 = vsel %vm45_vm0, %v129_v10, 0.0 }
  0xd0   :  { %134 = vadd.xlane.f32.xlu0 %v133_v12 }
  0xd4   :  { %137 = vadd.xlane.f32.xlu0 %v136_v13 }
 0x159   :  { %v135_v14 = vpop.xlane.xlu0 %134 }
 0x15a   :  { %v140_v15 = vmul.f32 0.03125, %v135_v14 }
 0x15c   :  { %v142_v16 = vsub.f32 %v129_v10, %v140_v15 }
 0x15d   :  { %v138_v17 = vpop.xlane.xlu0 %137 }
 0x15e   :  { %v141_v18 = vmul.f32 0.03125, %v138_v17  ;;  %v144_v19 = vmul.f32 %v142_v16, %v142_v16 }
 0x160   :  { %v143_v20 = vsub.f32 %v130_v11, %v141_v18  ;;  %v146_v21 = vsel %vm45_vm0, %v144_v19, 0.0 }
 0x161   :  { %147 = vadd.xlane.f32.xlu1 %v146_v21  ;;  %v441_v21 = vld [vmem:[%s706_s9] ss:$0 sm:$0xff] }
 0x162   :  { %v145_v22 = vmul.f32 %v143_v20, %v143_v20 }
 0x164   :  { %v149_v23 = vsel %vm45_vm0, %v145_v22, 0.0 }
 0x165   :  { %150 = vadd.xlane.f32.xlu1 %v149_v23 }
 0x1ea   :  { %v148_v32 = vpop.xlane.xlu1 %147 }
 0x1eb   :  { %v152_v33 = vmul.f32 0.03125, %v148_v32 }
 0x1ed   :  { %v154_v34 = vadd.f32 1e-05, %v152_v33 }
 0x1ee   :  { %v151_v35 = vpop.xlane.xlu1 %150 }
 0x1ef   :  { %509 = vrsqrt.f32 %v154_v34  ;;  %v153_v36 = vmul.f32 0.03125, %v151_v35 }
 0x1f1   :  { %v155_v37 = vadd.f32 1e-05, %v153_v36 }
 0x1f3   :  { %511 = vrsqrt.f32 %v155_v37 }
 0x1fc   :  { %v510_v38 = vpop.eup %509 }
 0x1fd   :  { %v158_v40 = vmul.f32 %v510_v38, %v142_v16 }
 0x1ff   :  { %v166_v42 = vmul.f32 %v433_v39, %v158_v40 }
 0x200   :  { %v512_v43 = vpop.eup %511 }
 0x201   :  { %v159_v44 = vmul.f32 %v512_v43, %v143_v20  ;;  %v174_v45 = vadd.f32 %v434_v41, %v166_v42 }
 0x203   :  { %v167_v46 = vmul.f32 %v433_v39, %v159_v44  ;;  %484 = vmatprep.mubr.msk.f32.mxu1 %vm45_vm0, %v174_v45 }
 0x205   :  { %v175_v47 = vadd.f32 %v434_v41, %v167_v46 }
 0x207   :  { %485 = vmatmul.mubr.msk.f32.vlgmr.msra.gmra.mxu1 %vm45_vm0, %v175_v47 }
 0x2c7   :  { %v486_v53 = vpop.f32.mrf.mxu1 }
 0x2c8   :  { %v265_v54 = vadd.f32 %v486_v53, %v435_v52 }
 0x2c9   :  { %v259_v55 = vpop.f32.mrf.mxu1 }
 0x2ca   :  { %v260_v56 = vadd.f32 %v435_v52, %v259_v55  ;;  %v269_v58 = vmax.f32 %v265_v54, 0.0 }
 0x2cc   :  { %v268_v57 = vmax.f32 %v260_v56, 0.0 }
 0x2ce   :  { %503 = vmatprep.mubr.msk.f32.mxu0 %vm285_vm1, %v268_v57 }
 0x2cf   :  { %504 = vmatmul.mubr.msk.f32.vlgmr.msra.gmra.mxu0 %vm285_vm1, %v269_v58 }
 0x38f   :  { %v505_v60 = vpop.f32.mrf.mxu0 }
 0x390   :  { %v364_v61 = vadd.f32 %v505_v60, %v438_v59 }
 0x391   :  { %v358_v62 = vpop.f32.mrf.mxu0 }
 0x392   :  { %v359_v63 = vadd.f32 %v438_v59, %v358_v62  ;;  %v368_v0 = vadd.f32 %v364_v61, %v175_v47 }
 0x394   :  { %v374_v1 = vsel %vm45_vm0, %v368_v0, 0.0  ;;  %v367_v2 = vadd.f32 %v359_v63, %v174_v45 }
 0x395   :  { %375 = vadd.xlane.f32.xlu1 %v374_v1 }
 0x396   :  { %v371_v3 = vsel %vm45_vm0, %v367_v2, 0.0 }
 0x397   :  { %372 = vadd.xlane.f32.xlu0 %v371_v3 }
 0x41e   :  { %v376_v4 = vpop.xlane.xlu1 %375 }
 0x41f   :  { %v378_v5 = vmul.f32 0.03125, %v376_v4 }
 0x420   :  { %v373_v6 = vpop.xlane.xlu0 %372 }
 0x421   :  { %v380_v7 = vsub.f32 %v368_v0, %v378_v5  ;;  %v377_v8 = vmul.f32 0.03125, %v373_v6 }
 0x423   :  { %v379_v9 = vsub.f32 %v367_v2, %v377_v8  ;;  %v382_v10 = vmul.f32 %v380_v7, %v380_v7 }
 0x425   :  { %v386_v11 = vsel %vm45_vm0, %v382_v10, 0.0  ;;  %v381_v12 = vmul.f32 %v379_v9, %v379_v9 }
 0x426   :  { %387 = vadd.xlane.f32.xlu1 %v386_v11 }
 0x427   :  { %v383_v13 = vsel %vm45_vm0, %v381_v12, 0.0 }
 0x428   :  { %384 = vadd.xlane.f32.xlu0 %v383_v13 }
 0x4af   :  { %v388_v14 = vpop.xlane.xlu1 %387 }
 0x4b0   :  { %v390_v15 = vmul.f32 0.03125, %v388_v14 }
 0x4b1   :  { %v385_v16 = vpop.xlane.xlu0 %384 }
 0x4b2   :  { %v392_v17 = vadd.f32 1e-05, %v390_v15  ;;  %v389_v18 = vmul.f32 0.03125, %v385_v16 }
 0x4b4   :  { %513 = vrsqrt.f32 %v392_v17  ;;  %v391_v19 = vadd.f32 1e-05, %v389_v18 }
 0x4b6   :  { %515 = vrsqrt.f32 %v391_v19 }
 0x4c1   :  { %v514_v20 = vpop.eup %513 }
 0x4c2   :  { %v396_v22 = vmul.f32 %v514_v20, %v380_v7 }
 0x4c3   :  { %v516_v23 = vpop.eup %515 }
 0x4c4   :  { %v395_v25 = vmul.f32 %v516_v23, %v379_v9  ;;  %v404_v26 = vmul.f32 %v441_v21, %v396_v22 }
 0x4c6   :  { %v403_v27 = vmul.f32 %v441_v21, %v395_v25  ;;  %v412_v28 = vadd.f32 %v442_v24, %v404_v26 }
 0x4c8   :  { %v411_v29 = vadd.f32 %v442_v24, %v403_v27  ;;  %414 = vst.msk [vmem:[#allocation2 + $0x8] sm:$0xff] %vm45_vm0, %v412_v28 }
 0x4ca   :  { %413 = vst.msk [vmem:[#allocation2] sm:$0xff] %vm45_vm0, %v411_v29 }
 0x4cb   :  { %528 = shalt.err (!%p525_p4)
}
 0x4cc   :  { %s540_s9 = smov 128   ;;  %s541_s10 = smov 8  }
 0x4cd   :  { %426 = dma.vmem_to_hbm [thread:$0]  %s421_s20, 256, %s708_s11, [#allocation3], %s540_s9, %s540_s9, %s541_s10  }
 0x4ce   :  { %537 = dma.done.wait [#allocation3], 256  }
 0x4cf   :  { %538 = vsyncadd [#allocation3], 4294967040 }
 0x4d0   :  { %430 = vsyncpa [#allocation3], 1 }

</bundles_post_ra>
